<compile_context>
chip_gen: v6e
topology: v6e:2x2x1
jax: 0.10.0
libtpu: 0.0.40
codegen_flags: <defaults>
</compile_context>

<pallas_src>
import math
import functools

import jax
import jax.numpy as jnp
from jax.experimental import pallas as pl
from jax.experimental.pallas import tpu as pltpu


def _dwconv_kernel(x_ref, wdw_ref, wpwt_ref, t1_ref, t2_ref, o_ref, *, th, w):
    """Fused depthwise-3x3 + bias/BN + ReLU6 + pointwise-1x1 + bias/BN + ReLU6.

    x_ref   : (1, 1, th+2, w+2, Cin)  one zero-padded halo row strip (NHWC)
    wdw_ref : (9, Cin)    f32 depthwise taps, BN1 scale pre-folded
    wpwt_ref: (Cout, Cin) bf16 pointwise weights (transposed), BN2 pre-folded
    t1_ref  : (1, Cin)    f32 folded (dw-bias + BN1) shift
    t2_ref  : (Cout, 1)   f32 folded (pw-bias + BN2) shift
    o_ref   : (1, Cout, th*w) channels-first, lane-dense output strip
    """
    cin = x_ref.shape[-1]
    cout = o_ref.shape[1]

    # Hoisted kw views read straight off the block ref (no full-strip temp):
    # kw = 1, 2 are sublane-offset slices -> 2 relayout copies total.
    xw = tuple(x_ref[0, 0, :, kw:kw + w, :] for kw in range(3))

    # Depthwise 3x3, stride 1: 9 shifted multiply-accumulates.  kh shifts land
    # on a non-minor axis -> pure addressing.  Kept in f32 (safe on v5e).
    # TODO(synk): run this MAC loop in bf16 on v6e/v7x (packed 16x128 vregs).
    acc = jnp.zeros((th, w, cin), jnp.float32)
    for kh in range(3):
        for kw in range(3):
            acc = acc + xw[kw][kh:kh + th, :, :] * wdw_ref[kh * 3 + kw, :]

    dw = jnp.clip(acc + t1_ref[...], 0.0, 6.0)               # (th, w, cin) f32

    # Pointwise 1x1 as an NT matmul on bf16 MXU operands with f32 accumulation:
    # (Cout,Cin).bf16 x (th*w,Cin).bf16^T -> (Cout, th*w).f32.  ReLU6 bounds dw
    # to [0, 6] so the bf16 cast is well inside tolerance.  The reshape is a
    # free sublane merge because w % 8 == 0 (wrapper pads W).
    dw_b = dw.reshape(th * w, cin).astype(jnp.bfloat16)
    pw = jax.lax.dot_general(
        wpwt_ref[...], dw_b,
        dimension_numbers=(((1,), (1,)), ((), ())),
        preferred_element_type=jnp.float32)                  # (cout, th*w)
    pw = jnp.clip(pw + t2_ref[...], 0.0, 6.0)

    # Channels-first result => lane-dense trailing dim (unmasked vst) and the
    # wrapper reshapes straight to NCHW with no transpose.
    o_ref[...] = pw.reshape(1, cout, th * w).astype(o_ref.dtype)


def _vmem_limit_bytes():
    """~75% of the per-TensorCore VMEM of the current generation.

    v7x: 64 MiB -> ~48 MiB; v5e/v6e: 128 MiB -> ~96 MiB.  Falls back to the
    most conservative (v7x) capacity if the query is unavailable."""
    cap = None
    try:
        cap = getattr(pltpu.get_tpu_info(), "vmem_capacity_bytes", None)
    except Exception:
        cap = None
    if not cap:
        cap = 64 << 20
    return int(cap) * 3 // 4


def _pick_row_strip(h, w, cin, cout, out_bytes, budget_bytes, max_th):
    """Largest row strip TH (dividing H, TH <= max_th) whose *total* VMEM
    footprint -- double-buffered input strip block, double-buffered output
    strip, weight blocks, and in-kernel temporaries -- fits the budget, with a
    lane-aligned output strip ((TH*W) % 128 == 0 unless TH == H)."""
    wp = w + 2

    def fits(th):
        blocks = (
            2 * (th + 2) * wp * cin * 4           # double-buffered input strip
            + 2 * cout * th * w * out_bytes       # double-buffered output strip
            + 2 * (9 * cin * 4 + cout * cin * 2   # weights/shifts (2x buffered)
                   + cin * 4 + cout * 4))
        temps = (
            3 * (th + 2) * w * cin * 4            # hoisted kw views
            + 2 * th * w * cin * 4                # acc + dw (f32)
            + th * w * cin * 2                    # dw bf16 matmul operand
            + 2 * cout * th * w * 4)              # pw f32 + headroom
        return blocks + temps <= budget_bytes

    divisors = [t for t in range(min(h, max_th), 0, -1) if h % t == 0]
    for th in divisors:
        if th != h and (th * w) % 128:
            continue                              # keep output stores unmasked
        if fits(th):
            return th
    # Nothing aligned fits the budget: smallest aligned strip, else whole image.
    for th in reversed(divisors):
        if th == h or (th * w) % 128 == 0:
            return th
    return h


def dwconv_layer(x_nchw, w_dw, b_dw, w_pw, b_pw, eps=1e-5,
                 out_dtype=jnp.float32):
    """Forward pass of DWConvLayer (defaults: stride=1, k=3, pad=1, relu6,
    batch_norm=True, last_act=True, pooling=None).

    x_nchw: (N, Cin, H, W) float32
    w_dw  : (Cin, 1, 3, 3)    depthwise conv weight (PyTorch layout)
    b_dw  : (Cin,)
    w_pw  : (Cout, Cin, 1, 1) pointwise conv weight (PyTorch layout)
    b_pw  : (Cout,)
    returns (N, Cout, H, W) in out_dtype (bf16 halves HBM writeback if the
    consumer accepts it; default f32).
    """
    n, cin, h, w = x_nchw.shape
    cout = w_pw.shape[0]

    # NCHW -> NHWC (channels on the 128-lane axis).  Pad W to a multiple of 8
    # so the in-kernel reshape before the matmul is a free sublane merge, then
    # zero-pad spatially for the 3x3 conv.  XLA fuses these into one copy.
    # TODO(synk): accept/return NHWC end-to-end to drop this copy entirely.
    x = jnp.transpose(x_nchw, (0, 2, 3, 1)).astype(jnp.float32)
    w_pad = (-w) % 8
    w_eff = w + w_pad
    if w_pad:
        x = jnp.pad(x, ((0, 0), (0, 0), (0, w_pad), (0, 0)))
    xp = jnp.pad(x, ((0, 0), (1, 1), (1, 1), (0, 0)))
    wp = w_eff + 2

    # Fold inference BatchNorm (init stats: mean=0, var=1, gamma=1, beta=0) and
    # the conv biases into the weights / per-channel shifts.
    gamma1 = jnp.ones((cin,), jnp.float32)
    beta1 = jnp.zeros((cin,), jnp.float32)
    mean1 = jnp.zeros((cin,), jnp.float32)
    var1 = jnp.ones((cin,), jnp.float32)
    s1 = gamma1 / jnp.sqrt(var1 + eps)
    t1 = (b_dw - mean1) * s1 + beta1

    gamma2 = jnp.ones((cout,), jnp.float32)
    beta2 = jnp.zeros((cout,), jnp.float32)
    mean2 = jnp.zeros((cout,), jnp.float32)
    var2 = jnp.ones((cout,), jnp.float32)
    s2 = gamma2 / jnp.sqrt(var2 + eps)
    t2 = (b_pw - mean2) * s2 + beta2

    # Depthwise taps (9, Cin) f32 with the BN1 scale folded in.
    wdw = jnp.transpose(w_dw[:, 0, :, :], (1, 2, 0)).reshape(9, cin) * s1[None, :]
    # Pointwise weights transposed (Cout, Cin), BN2 folded, cast to bf16 (MXU).
    wpwt = (w_pw[:, :, 0, 0] * s2[:, None]).astype(jnp.bfloat16)

    t1 = t1.reshape(1, cin).astype(jnp.float32)
    t2 = t2.reshape(cout, 1).astype(jnp.float32)

    vmem_limit = _vmem_limit_bytes()
    out_bytes = jnp.dtype(out_dtype).itemsize
    # Guarantee >=2 parallel grid steps (v7x has 2 TensorCores): with N == 1,
    # cap the strip at H/2 even if a larger one would fit.
    max_th = h if n >= 2 else max(1, h // 2)
    th = _pick_row_strip(h, w_eff, cin, cout, out_bytes,
                         budget_bytes=int(vmem_limit * 0.85), max_th=max_th)
    s_cnt = h // th

    # Materialize halo row strips (N, S, th+2, W+2, Cin): only one strip (not
    # the whole padded image) is resident / double-buffered per grid step, and
    # each TensorCore only reads its own strips from HBM.  Duplicates just two
    # rows per strip; for S == 1 this is effectively a reshape.
    # TODO(synk): zero-copy halo blocks (pl.Element / manual DMA) for huge
    # images to avoid this wrapper-side copy.
    xs_strips = jnp.stack(
        [xp[:, s * th:s * th + th + 2] for s in range(s_cnt)], axis=1)

    kernel = functools.partial(_dwconv_kernel, th=th, w=w_eff)
    flops = 2 * n * h * w_eff * cin * (9 + cout)
    bytes_accessed = (xs_strips.size * 4
                      + n * cout * h * w_eff * out_bytes
                      + wpwt.size * 2 + wdw.size * 4 + t1.size * 4 + t2.size * 4)

    out_flat = pl.pallas_call(
        kernel,
        out_shape=jax.ShapeDtypeStruct((n, cout, h * w_eff), out_dtype),
        grid_spec=pltpu.PrefetchScalarGridSpec(
            num_scalar_prefetch=0,
            grid=(n, s_cnt),
            in_specs=[
                # One halo row strip per step (blocked indexing on the strip
                # axis -> standard double-buffered pipelining of just th+2 rows).
                pl.BlockSpec((1, 1, th + 2, wp, cin),
                             lambda i, j: (i, j, 0, 0, 0)),
                # Constant-index weight/shift blocks (fetched once).
                # TODO(synk): pipeline_mode=pl.Buffered(1) to drop their second
                # buffer when Cout*Cin is large.
                pl.BlockSpec((9, cin), lambda i, j: (0, 0)),
                pl.BlockSpec((cout, cin), lambda i, j: (0, 0)),
                pl.BlockSpec((1, cin), lambda i, j: (0, 0)),
                pl.BlockSpec((cout, 1), lambda i, j: (0, 0)),
            ],
            out_specs=pl.BlockSpec((1, cout, th * w_eff),
                                   lambda i, j: (i, 0, j)),
        ),
        compiler_params=pltpu.CompilerParams(
            dimension_semantics=("parallel", "parallel"),
            vmem_limit_bytes=vmem_limit),
        cost_estimate=pl.CostEstimate(
            flops=flops, transcendentals=0, bytes_accessed=bytes_accessed),
    )(xs_strips, wdw, wpwt, t1, t2)

    # (N, Cout, H*W_eff) -> (N, Cout, H, W): pure reshape (+ crop of the W pad).
    out = out_flat.reshape(n, cout, h, w_eff)
    if w_pad:
        out = out[:, :, :, :w]
    return out


def _reference(x_nchw, w_dw, b_dw, w_pw, b_pw, eps=1e-5):
    """Pure-JAX (XLA) reference for correctness checking."""
    cin = x_nchw.shape[1]
    y = jax.lax.conv_general_dilated(
        x_nchw, w_dw, window_strides=(1, 1), padding=((1, 1), (1, 1)),
        feature_group_count=cin,
        dimension_numbers=("NCHW", "OIHW", "NCHW"))
    y = y + b_dw[None, :, None, None]
    y = y / jnp.sqrt(1.0 + eps)                     # BN (init running stats)
    y = jnp.clip(y, 0.0, 6.0)
    y = jax.lax.conv_general_dilated(
        y, w_pw, window_strides=(1, 1), padding=((0, 0), (0, 0)),
        dimension_numbers=("NCHW", "OIHW", "NCHW"))
    y = y + b_pw[None, :, None, None]
    y = y / jnp.sqrt(1.0 + eps)
    y = jnp.clip(y, 0.0, 6.0)
    return y


if __name__ == "__main__":
    # Small shapes consistent with the module's forward (NCHW input).
    N, Cin, Cout, H, W = 2, 4, 8, 16, 16

    key = jax.random.PRNGKey(0)
    kx, k1, k2 = jax.random.split(key, 3)

    x = jax.random.normal(kx, (N, Cin, H, W), dtype=jnp.float32)

    # Deterministic kaiming_normal_(mode='fan_out', nonlinearity='relu') init.
    std_dw = math.sqrt(2.0 / (Cin * 3 * 3))
    w_dw = std_dw * jax.random.normal(k1, (Cin, 1, 3, 3), dtype=jnp.float32)
    b_dw = jnp.zeros((Cin,), jnp.float32)

    std_pw = math.sqrt(2.0 / Cout)
    w_pw = std_pw * jax.random.normal(k2, (Cout, Cin, 1, 1), dtype=jnp.float32)
    b_pw = jnp.zeros((Cout,), jnp.float32)

    out = dwconv_layer(x, w_dw, b_dw, w_pw, b_pw)
    out = jax.block_until_ready(out)

    ref = jax.block_until_ready(_reference(x, w_dw, b_dw, w_pw, b_pw))
    assert out.shape == (N, Cout, H, W), out.shape
    assert jnp.allclose(out, ref, rtol=1e-2, atol=1e-2), (
        float(jnp.max(jnp.abs(out - ref))))

    print("KERNEL_OK")
</pallas_src>

<mosaic_0001>
module attributes {stable_mosaic.version = 11 : i64} {
  func.func @_dwconv_kernel(%arg0: i32, %arg1: i32, %arg2: memref<1x1x18x18x4xf32, #tpu.memory_space<vmem>>, %arg3: memref<9x4xf32, #tpu.memory_space<vmem>>, %arg4: memref<8x4xbf16, #tpu.memory_space<vmem>>, %arg5: memref<1x4xf32, #tpu.memory_space<vmem>>, %arg6: memref<8x1xf32, #tpu.memory_space<vmem>>, %arg7: memref<1x8x256xf32, #tpu.memory_space<vmem>>) attributes {dimension_semantics = [#tpu.dimension_semantics<parallel>, #tpu.dimension_semantics<parallel>], iteration_bounds = array<i64: 2, 1>, scalar_prefetch = 0 : i64, scratch_operands = 0 : i64, tpu.core_type = #tpu.core_type<tc>, window_params = [{transform_indices = @transform_0, window_bounds = array<i64: 1, 1, 18, 18, 4>}, {pipeline_mode = #tpu.pipeline_mode<synchronous>, transform_indices = @transform_1, window_bounds = array<i64: 9, 4>}, {pipeline_mode = #tpu.pipeline_mode<synchronous>, transform_indices = @transform_2, window_bounds = array<i64: 8, 4>}, {pipeline_mode = #tpu.pipeline_mode<synchronous>, transform_indices = @transform_3, window_bounds = array<i64: 1, 4>}, {pipeline_mode = #tpu.pipeline_mode<synchronous>, transform_indices = @transform_4, window_bounds = array<i64: 8, 1>}, {transform_indices = @transform_5, window_bounds = array<i64: 1, 8, 256>}]} {
    %c0 = arith.constant 0 : index
    %c0_0 = arith.constant 0 : index
    %c0_1 = arith.constant 0 : index
    %c0_2 = arith.constant 0 : index
    %c0_3 = arith.constant 0 : index
    %0 = vector.load %arg2[%c0, %c0_0, %c0_1, %c0_2, %c0_3] : memref<1x1x18x18x4xf32, #tpu.memory_space<vmem>>, vector<1x1x18x16x4xf32>
    %1 = vector.shape_cast %0 : vector<1x1x18x16x4xf32> to vector<18x16x4xf32>
    %c0_4 = arith.constant 0 : index
    %c0_5 = arith.constant 0 : index
    %c0_6 = arith.constant 0 : index
    %c1 = arith.constant 1 : index
    %c0_7 = arith.constant 0 : index
    %2 = vector.load %arg2[%c0_4, %c0_5, %c0_6, %c1, %c0_7] : memref<1x1x18x18x4xf32, #tpu.memory_space<vmem>>, vector<1x1x18x16x4xf32>
    %3 = vector.shape_cast %2 : vector<1x1x18x16x4xf32> to vector<18x16x4xf32>
    %c0_8 = arith.constant 0 : index
    %c0_9 = arith.constant 0 : index
    %c0_10 = arith.constant 0 : index
    %c2 = arith.constant 2 : index
    %c0_11 = arith.constant 0 : index
    %4 = vector.load %arg2[%c0_8, %c0_9, %c0_10, %c2, %c0_11] : memref<1x1x18x18x4xf32, #tpu.memory_space<vmem>>, vector<1x1x18x16x4xf32>
    %5 = vector.shape_cast %4 : vector<1x1x18x16x4xf32> to vector<18x16x4xf32>
    %cst = arith.constant 0.000000e+00 : f32
    %6 = vector.broadcast %cst : f32 to vector<16x16x4xf32>
    %7 = vector.extract_strided_slice %1 {offsets = [0, 0, 0], sizes = [16, 16, 4], strides = [1, 1, 1]} : vector<18x16x4xf32> to vector<16x16x4xf32>
    %c0_12 = arith.constant 0 : index
    %c0_13 = arith.constant 0 : index
    %8 = vector.load %arg3[%c0_12, %c0_13] : memref<9x4xf32, #tpu.memory_space<vmem>>, vector<1x4xf32>
    %9 = vector.shape_cast %8 : vector<1x4xf32> to vector<4xf32>
    %10 = vector.shape_cast %9 : vector<4xf32> to vector<1x1x4xf32>
    %11 = vector.broadcast %10 : vector<1x1x4xf32> to vector<16x16x4xf32>
    %12 = arith.mulf %7, %11 : vector<16x16x4xf32>
    %13 = arith.addf %6, %12 : vector<16x16x4xf32>
    %14 = vector.extract_strided_slice %3 {offsets = [0, 0, 0], sizes = [16, 16, 4], strides = [1, 1, 1]} : vector<18x16x4xf32> to vector<16x16x4xf32>
    %c1_14 = arith.constant 1 : index
    %c0_15 = arith.constant 0 : index
    %15 = vector.load %arg3[%c1_14, %c0_15] : memref<9x4xf32, #tpu.memory_space<vmem>>, vector<1x4xf32>
    %16 = vector.shape_cast %15 : vector<1x4xf32> to vector<4xf32>
    %17 = vector.shape_cast %16 : vector<4xf32> to vector<1x1x4xf32>
    %18 = vector.broadcast %17 : vector<1x1x4xf32> to vector<16x16x4xf32>
    %19 = arith.mulf %14, %18 : vector<16x16x4xf32>
    %20 = arith.addf %13, %19 : vector<16x16x4xf32>
    %21 = vector.extract_strided_slice %5 {offsets = [0, 0, 0], sizes = [16, 16, 4], strides = [1, 1, 1]} : vector<18x16x4xf32> to vector<16x16x4xf32>
    %c2_16 = arith.constant 2 : index
    %c0_17 = arith.constant 0 : index
    %22 = vector.load %arg3[%c2_16, %c0_17] : memref<9x4xf32, #tpu.memory_space<vmem>>, vector<1x4xf32>
    %23 = vector.shape_cast %22 : vector<1x4xf32> to vector<4xf32>
    %24 = vector.shape_cast %23 : vector<4xf32> to vector<1x1x4xf32>
    %25 = vector.broadcast %24 : vector<1x1x4xf32> to vector<16x16x4xf32>
    %26 = arith.mulf %21, %25 : vector<16x16x4xf32>
    %27 = arith.addf %20, %26 : vector<16x16x4xf32>
    %28 = vector.extract_strided_slice %1 {offsets = [1, 0, 0], sizes = [16, 16, 4], strides = [1, 1, 1]} : vector<18x16x4xf32> to vector<16x16x4xf32>
    %c3 = arith.constant 3 : index
    %c0_18 = arith.constant 0 : index
    %29 = vector.load %arg3[%c3, %c0_18] : memref<9x4xf32, #tpu.memory_space<vmem>>, vector<1x4xf32>
    %30 = vector.shape_cast %29 : vector<1x4xf32> to vector<4xf32>
    %31 = vector.shape_cast %30 : vector<4xf32> to vector<1x1x4xf32>
    %32 = vector.broadcast %31 : vector<1x1x4xf32> to vector<16x16x4xf32>
    %33 = arith.mulf %28, %32 : vector<16x16x4xf32>
    %34 = arith.addf %27, %33 : vector<16x16x4xf32>
    %35 = vector.extract_strided_slice %3 {offsets = [1, 0, 0], sizes = [16, 16, 4], strides = [1, 1, 1]} : vector<18x16x4xf32> to vector<16x16x4xf32>
    %c4 = arith.constant 4 : index
    %c0_19 = arith.constant 0 : index
    %36 = vector.load %arg3[%c4, %c0_19] : memref<9x4xf32, #tpu.memory_space<vmem>>, vector<1x4xf32>
    %37 = vector.shape_cast %36 : vector<1x4xf32> to vector<4xf32>
    %38 = vector.shape_cast %37 : vector<4xf32> to vector<1x1x4xf32>
    %39 = vector.broadcast %38 : vector<1x1x4xf32> to vector<16x16x4xf32>
    %40 = arith.mulf %35, %39 : vector<16x16x4xf32>
    %41 = arith.addf %34, %40 : vector<16x16x4xf32>
    %42 = vector.extract_strided_slice %5 {offsets = [1, 0, 0], sizes = [16, 16, 4], strides = [1, 1, 1]} : vector<18x16x4xf32> to vector<16x16x4xf32>
    %c5 = arith.constant 5 : index
    %c0_20 = arith.constant 0 : index
    %43 = vector.load %arg3[%c5, %c0_20] : memref<9x4xf32, #tpu.memory_space<vmem>>, vector<1x4xf32>
    %44 = vector.shape_cast %43 : vector<1x4xf32> to vector<4xf32>
    %45 = vector.shape_cast %44 : vector<4xf32> to vector<1x1x4xf32>
    %46 = vector.broadcast %45 : vector<1x1x4xf32> to vector<16x16x4xf32>
    %47 = arith.mulf %42, %46 : vector<16x16x4xf32>
    %48 = arith.addf %41, %47 : vector<16x16x4xf32>
    %49 = vector.extract_strided_slice %1 {offsets = [2, 0, 0], sizes = [16, 16, 4], strides = [1, 1, 1]} : vector<18x16x4xf32> to vector<16x16x4xf32>
    %c6 = arith.constant 6 : index
    %c0_21 = arith.constant 0 : index
    %50 = vector.load %arg3[%c6, %c0_21] : memref<9x4xf32, #tpu.memory_space<vmem>>, vector<1x4xf32>
    %51 = vector.shape_cast %50 : vector<1x4xf32> to vector<4xf32>
    %52 = vector.shape_cast %51 : vector<4xf32> to vector<1x1x4xf32>
    %53 = vector.broadcast %52 : vector<1x1x4xf32> to vector<16x16x4xf32>
    %54 = arith.mulf %49, %53 : vector<16x16x4xf32>
    %55 = arith.addf %48, %54 : vector<16x16x4xf32>
    %56 = vector.extract_strided_slice %3 {offsets = [2, 0, 0], sizes = [16, 16, 4], strides = [1, 1, 1]} : vector<18x16x4xf32> to vector<16x16x4xf32>
    %c7 = arith.constant 7 : index
    %c0_22 = arith.constant 0 : index
    %57 = vector.load %arg3[%c7, %c0_22] : memref<9x4xf32, #tpu.memory_space<vmem>>, vector<1x4xf32>
    %58 = vector.shape_cast %57 : vector<1x4xf32> to vector<4xf32>
    %59 = vector.shape_cast %58 : vector<4xf32> to vector<1x1x4xf32>
    %60 = vector.broadcast %59 : vector<1x1x4xf32> to vector<16x16x4xf32>
    %61 = arith.mulf %56, %60 : vector<16x16x4xf32>
    %62 = arith.addf %55, %61 : vector<16x16x4xf32>
    %63 = vector.extract_strided_slice %5 {offsets = [2, 0, 0], sizes = [16, 16, 4], strides = [1, 1, 1]} : vector<18x16x4xf32> to vector<16x16x4xf32>
    %c8 = arith.constant 8 : index
    %c0_23 = arith.constant 0 : index
    %64 = vector.load %arg3[%c8, %c0_23] : memref<9x4xf32, #tpu.memory_space<vmem>>, vector<1x4xf32>
    %65 = vector.shape_cast %64 : vector<1x4xf32> to vector<4xf32>
    %66 = vector.shape_cast %65 : vector<4xf32> to vector<1x1x4xf32>
    %67 = vector.broadcast %66 : vector<1x1x4xf32> to vector<16x16x4xf32>
    %68 = arith.mulf %63, %67 : vector<16x16x4xf32>
    %69 = arith.addf %62, %68 : vector<16x16x4xf32>
    %c0_24 = arith.constant 0 : index
    %c0_25 = arith.constant 0 : index
    %70 = vector.load %arg5[%c0_24, %c0_25] : memref<1x4xf32, #tpu.memory_space<vmem>>, vector<1x4xf32>
    %71 = vector.shape_cast %70 : vector<1x4xf32> to vector<1x1x4xf32>
    %72 = vector.broadcast %71 : vector<1x1x4xf32> to vector<16x16x4xf32>
    %73 = arith.addf %69, %72 : vector<16x16x4xf32>
    %cst_26 = arith.constant 0.000000e+00 : f32
    %cst_27 = arith.constant 6.000000e+00 : f32
    %74 = vector.broadcast %cst_26 : f32 to vector<16x16x4xf32>
    %75 = arith.maximumf %74, %73 : vector<16x16x4xf32>
    %76 = vector.broadcast %cst_27 : f32 to vector<16x16x4xf32>
    %77 = arith.minimumf %76, %75 : vector<16x16x4xf32>
    %78 = vector.shape_cast %77 : vector<16x16x4xf32> to vector<256x4xf32>
    %79 = arith.truncf %78 : vector<256x4xf32> to vector<256x4xbf16>
    %c0_28 = arith.constant 0 : index
    %c0_29 = arith.constant 0 : index
    %80 = vector.load %arg4[%c0_28, %c0_29] : memref<8x4xbf16, #tpu.memory_space<vmem>>, vector<8x4xbf16>
    %cst_30 = arith.constant dense<0.000000e+00> : vector<8x256xf32>
    %81 = tpu.matmul %80, %79, %cst_30 {dimension_numbers = #tpu.dot_dimension_numbers<[1], [1], [0], [0], [0, 0, 1, 0], [], []>} : vector<8x4xbf16>, vector<256x4xbf16>, vector<8x256xf32> -> vector<8x256xf32>
    %c0_31 = arith.constant 0 : index
    %c0_32 = arith.constant 0 : index
    %82 = vector.load %arg6[%c0_31, %c0_32] : memref<8x1xf32, #tpu.memory_space<vmem>>, vector<8x1xf32>
    %83 = vector.broadcast %82 : vector<8x1xf32> to vector<8x256xf32>
    %84 = arith.addf %81, %83 : vector<8x256xf32>
    %cst_33 = arith.constant 0.000000e+00 : f32
    %cst_34 = arith.constant 6.000000e+00 : f32
    %85 = vector.broadcast %cst_33 : f32 to vector<8x256xf32>
    %86 = arith.maximumf %85, %84 : vector<8x256xf32>
    %87 = vector.broadcast %cst_34 : f32 to vector<8x256xf32>
    %88 = arith.minimumf %87, %86 : vector<8x256xf32>
    %89 = vector.shape_cast %88 : vector<8x256xf32> to vector<1x8x256xf32>
    %c0_35 = arith.constant 0 : index
    %c0_36 = arith.constant 0 : index
    %c0_37 = arith.constant 0 : index
    %90 = vector.load %arg7[%c0_35, %c0_36, %c0_37] : memref<1x8x256xf32, #tpu.memory_space<vmem>>, vector<1x8x256xf32>
    tpu.vector_store %arg7[%c0_35, %c0_36, %c0_37], %89 {strides = array<i32>} : memref<1x8x256xf32, #tpu.memory_space<vmem>>, vector<1x8x256xf32>,
    return
  }
  func.func @transform_0(%arg0: i32, %arg1: i32) -> (i32, i32, i32, i32, i32) {
    %c0_i32 = arith.constant 0 : i32
    %c0_i32_0 = arith.constant 0 : i32
    %c0_i32_1 = arith.constant 0 : i32
    %c0_i32_2 = arith.constant 0 : i32
    return %arg0, %arg1, %c0_i32, %c0_i32_0, %c0_i32_1 : i32, i32, i32, i32, i32
  }
  func.func @transform_1(%arg0: i32, %arg1: i32) -> (i32, i32) {
    %c0_i32 = arith.constant 0 : i32
    %c0_i32_0 = arith.constant 0 : i32
    %c0_i32_1 = arith.constant 0 : i32
    return %c0_i32, %c0_i32_0 : i32, i32
  }
  func.func @transform_2(%arg0: i32, %arg1: i32) -> (i32, i32) {
    %c0_i32 = arith.constant 0 : i32
    %c0_i32_0 = arith.constant 0 : i32
    %c0_i32_1 = arith.constant 0 : i32
    return %c0_i32, %c0_i32_0 : i32, i32
  }
  func.func @transform_3(%arg0: i32, %arg1: i32) -> (i32, i32) {
    %c0_i32 = arith.constant 0 : i32
    %c0_i32_0 = arith.constant 0 : i32
    %c0_i32_1 = arith.constant 0 : i32
    return %c0_i32, %c0_i32_0 : i32, i32
  }
  func.func @transform_4(%arg0: i32, %arg1: i32) -> (i32, i32) {
    %c0_i32 = arith.constant 0 : i32
    %c0_i32_0 = arith.constant 0 : i32
    %c0_i32_1 = arith.constant 0 : i32
    return %c0_i32, %c0_i32_0 : i32, i32
  }
  func.func @transform_5(%arg0: i32, %arg1: i32) -> (i32, i32, i32) {
    %c0_i32 = arith.constant 0 : i32
    %c0_i32_0 = arith.constant 0 : i32
    return %arg0, %c0_i32, %arg1 : i32, i32, i32
  }
}

</mosaic_0001>

<bundles_post_ra>
// kernel: tpu_custom_call.1
= control target key start
LH: loop header
LB: loop body
LE: loop exit
PB: predicated region body
PF: predicated region fallthrough
CT: control target
= control target key end

     0   :  { %10 = vsyncpa [#allocation3], 0  ;;  %s2710_s0 = inlined_call_operand.vmem [shape: f32[2,1,18,18,4], index: 0, kind: input, shape index: {}]   ;;  %s2711_s1 = inlined_call_operand.vmem [shape: f32[9,4], index: 1, kind: input, shape index: {}]   ;;  %s2712_s2 = inlined_call_operand.vmem [shape: bf16[8,4], index: 2, kind: input, shape index: {}]   ;;  %s2713_s3 = inlined_call_operand.vmem [shape: f32[1,4], index: 3, kind: input, shape index: {}]   ;;  %s2714_s4 = inlined_call_operand.vmem [shape: f32[8,1], index: 4, kind: input, shape index: {}]   ;;  %s2715_s5 = inlined_call_operand.hbm [shape: f32[2,8,256], index: 5, kind: output, shape index: {}]  }
   0x1   :  { %12 = vsyncpa [#allocation3 + $0x1], 0  ;;  %s1536_s18 = smov 0   ;;  %s1538_s19 = smov 0  }
   0x2   :  { %s1540_s20 = smov 0   ;;  %s1542_s21 = smov 0  }
   0x3   :  { %s1544_s22 = smov 0   ;;  %s1546_s23 = smov 0  }
   0x4 LB: > { %s1303_s24 = sadd.s32 4294967295, %s1502_s23   ;;  %s1304_s25 = sadd.s32 4294967294, %s1502_s23   ;;  %s1502_s23 = sphi %s1546_s23, %s18_s23   ;;  %s1498_s22 = sphi %s1544_s22, %s2808_s22   ;;  %s1494_s21 = sphi %s1542_s21, %s2807_s21   ;;  %s1490_s20 = sphi %s1540_s20, %s2806_s20   ;;  %s1486_s19 = sphi %s1538_s19, %s2805_s19   ;;  %s1482_s18 = sphi %s1536_s18, %s2804_s18  }
   0x5   : > { %s30_s26 = sadd.s32 1, %s1498_s22  ;;  %s151_s27 = sadd.s32 1, %s1490_s20 }
   0x6   : > { %p32_p0 = scmp.ge.s32.totalorder %s30_s26, 2  ;;  %p161_p1 = scmp.ne.s32.totalorder %s1490_s20, %s1486_s19 }
   0x7   : > { %p162_p2 = scmp.eq.s32.totalorder %s1303_s24, 1  ;;  %p167_p3 = scmp.ne.s32.totalorder %s1486_s19, %s1482_s18 }
   0x8   : > { %s2810_s26 = smov (%p32_p0, %s30_s26), 0  ;;  %p168_p5 = scmp.eq.s32.totalorder %s1304_s25, 1 }
   0x9   : > { %p1576_p4 = por %p162_p2, %p161_p1  ;;  %s146_s29 = ssub.s32 %s1498_s22, %s2810_s26 }
   0xa   : > { %p1307_p6 = scmp.ge.s32.totalorder %s1502_s23, 1  ;;  %p149_p7 = scmp.eq.s32.totalorder %s146_s29, 0 }
   0xb   : > { %p1583_p8 = por %p168_p5, %p167_p3  ;;  %p210_p9 = scmp.lt.s32.totalorder %s1502_s23, 3 }
   0xc   : > { %s1589_s6 = scalar_select %p149_p7, %s1490_s20, %s151_s27  }
   0xd   : > { %p211_p10 = pnand %p1307_p6, %p210_p9 }
   0xf   : > { %214 = sbr.rel (%p211_p10) target bundleno = 429 (0x1ad), region = 40 }
  0x14   : > { %p242_p11 = scmp.lt.s32.totalorder %s1494_s21, 1  ;;  %v1596_v0 = vld [vmem:[%s2711_s1] ss:$0 sm:$0xff]  ;;  %v1601_v1 = vld [vmem:[%s2711_s1 + $0x1] ss:$0 sm:$0xff]  ;;  %vm1108_vm0 = vcmask 31744  }
  0x15   : > { %v1606_v2 = vld [vmem:[%s2711_s1 + $0x3] ss:$0 sm:$0xff]  ;;  %v1616_v3 = vld [vmem:[%s2711_s1 + $0x4] ss:$0 sm:$0xff]  ;;  %v1621_v4 = vld [vmem:[%s2711_s1 + $0x6] ss:$0 sm:$0xff] }
  0x16   : > { %s243_s7 = scalar_select %p242_p11, %s1494_s21, 1  ;;  %v1626_v5 = vld [vmem:[%s2711_s1 + $0x7] ss:$0 sm:$0xff]  ;;  %v1640_v9 = vld [vmem:[%s2711_s1 + $0x2] ss:$0 sm:$0xff] }
  0x17   : > { %v1656_v16 = vld [vmem:[%s2711_s1 + $0x5] ss:$0 sm:$0xff]  ;;  %v1661_v17 = vld [vmem:[%s2711_s1 + $0x8] ss:$0 sm:$0xff]  ;;  %s239_s14 = sand.u32 1, %s1486_s19   ;;  %s1326_s16 = sshll.u32 %s1494_s21, 8 }
  0x18   : > { %s1353_s8 = smul.u32 432, %s243_s7  ;;  %s1308_s15 = sshll.u32 %s239_s14, 4 }
  0x19   : > { %s241_s24 = scalar_lea.vmem [#allocation2], %s1308_s15  ;;  %s1222_s7 = scalar_lea.hbm %s2715_s5, %s1326_s16 }
  0x1a   : > { %s1611_s17 = scalar_lea.vmem %s2710_s0, %s1353_s8  ;;  %s1224_s25 = sshll.u32 %s241_s24, 4  ;;  %s1225_s25 = int_to_ptr.vmem [resolvable:$true] %s1224_s25 }
  0x1b   : > { %v1629_v6 = vld [vmem:[%s1611_s17 + $0x168] sm:$0xff]  ;;  %v1632_v7 = vld [vmem:[%s1611_s17 + $0x170] sm:$0xff]  ;;  %v1635_v8 = vld [vmem:[%s1611_s17 + $0x180] sm:$0xff]  ;;  %s1208_s8 = scalar_lea.sflag [#allocation3], %s239_s14  ;;  %s1426_s9 = scalar_lea.vmem %s1225_s25, 256 }
  0x1c   : > { %2746 = vst [vmem:[#allocation5_spill] sm:$0xff] %v1629_v6  ;;  %2747 = vst [vmem:[#allocation6_spill] sm:$0xff] %v1632_v7  ;;  %v1643_v10 = vld [vmem:[%s1611_s17 + $0x188] sm:$0xff]  ;;  %v287_v11 = vld [vmem:[%s1611_s17 + $0x198] sm:$0xff]  ;;  %v396_v13 = vmul.f32 %v1596_v0, %v1629_v6  ;;  %v397_v14 = vmul.f32 %v1596_v0, %v1632_v7  ;;  %v603_v15 = vmul.f32 %v1606_v2, %v1635_v8  ;;  %p1427_p12 = scmp.ne.s32.totalorder %s1225_s25, %s1426_s9  ;;  %s1505_s21 = smov [#allocation2]  }
  0x1d   : > { %v288_v12 = vld [vmem:[%s1611_s17 + $0x1a0] sm:$0xff]  ;;  %v1665_v18 = vmul.f32 %v1606_v2, %v1629_v6  ;;  %v1668_v19 = vld [vmem:[%s1611_s17 + $0x169] sm:$0xff]  ;;  %v1671_v20 = vld [vmem:[%s1611_s17 + $0x171] sm:$0xff]  ;;  %v604_v22 = vmul.f32 %v1606_v2, %v1643_v10  ;;  %v1679_v23 = vmul.f32 %v1621_v4, %v287_v11  ;;  %v1686_v25 = vmul.f32 %v1606_v2, %v1632_v7  ;;  %s1430_s10 = sshll.u32 %s1505_s21, 4  ;;  %s1431_s10 = int_to_ptr.vmem [resolvable:$false] %s1430_s10 }
  0x1e   : > { %2749 = vst [vmem:[#allocation8_spill] sm:$0xff] %v1668_v19  ;;  %2750 = vst [vmem:[#allocation9_spill] sm:$0xff] %v1671_v20  ;;  %v1674_v21 = vld [vmem:[%s1611_s17 + $0x181] sm:$0xff]  ;;  %v1682_v24 = vmul.f32 %v1621_v4, %v288_v12  ;;  %v1689_v26 = vld [vmem:[%s1611_s17 + $0x189] sm:$0xff]  ;;  %v465_v29 = vmul.f32 %v1601_v1, %v1668_v19  ;;  %v466_v30 = vmul.f32 %v1601_v1, %v1671_v20  ;;  %p1428_p13 = pnand %p1427_p12, %p1576_p4  ;;  %p1433_p1 = scmp.lt.s32.totalorder %s1225_s25, %s1431_s10 }
  0x1f   : > { %2748 = vst [vmem:[#allocation7_spill] sm:$0xff] %v1665_v18  ;;  %2751 = vst [vmem:[#allocation10_spill] sm:$0xff] %v1686_v25  ;;  %v323_v27 = vld [vmem:[%s1611_s17 + $0x199] sm:$0xff]  ;;  %v324_v28 = vld [vmem:[%s1611_s17 + $0x1a1] sm:$0xff]  ;;  %v672_v31 = vmul.f32 %v1616_v3, %v1674_v21  ;;  %v1701_v32 = vmul.f32 %v1616_v3, %v1668_v19  ;;  %v673_v36 = vmul.f32 %v1616_v3, %v1689_v26 }
  0x20   : > { %v1704_v33 = vld [vmem:[%s1611_s17 + $0x16a] sm:$0xff]  ;;  %v1707_v34 = vld [vmem:[%s1611_s17 + $0x172] sm:$0xff]  ;;  %v1710_v35 = vld [vmem:[%s1611_s17 + $0x182] sm:$0xff]  ;;  %v1715_v37 = vmul.f32 %v1626_v5, %v323_v27  ;;  %v1718_v38 = vmul.f32 %v1626_v5, %v324_v28  ;;  %v1722_v39 = vmul.f32 %v1616_v3, %v1671_v20  ;;  %v497_v43 = vadd.f32 %v465_v29, %v396_v13  ;;  %p1429_p0 = pneg %p1428_p13 }
  0x21   : > { %2752 = vst [vmem:[#allocation11_spill] sm:$0xff] %v1701_v32  ;;  %2753 = vst [vmem:[#allocation12_spill] sm:$0xff] %v1710_v35  ;;  %v1725_v40 = vld [vmem:[%s1611_s17 + $0x18a] sm:$0xff]  ;;  %v359_v41 = vld [vmem:[%s1611_s17 + $0x19a] sm:$0xff]  ;;  %v498_v44 = vadd.f32 %v466_v30, %v397_v14  ;;  %v534_v45 = vmul.f32 %v1640_v9, %v1704_v33  ;;  %v535_v46 = vmul.f32 %v1640_v9, %v1707_v34 }
  0x22   : > { %2754 = vst [vmem:[#allocation13_spill] sm:$0xff] %v1722_v39  ;;  %2755 = vst [vmem:[#allocation14_spill] sm:$0xff] %v1725_v40  ;;  %v360_v42 = vld [vmem:[%s1611_s17 + $0x1a2] sm:$0xff]  ;;  %v741_v47 = vmul.f32 %v1656_v16, %v1710_v35  ;;  %v742_v48 = vmul.f32 %v1656_v16, %v1725_v40  ;;  %v1738_v49 = vmul.f32 %v1661_v17, %v359_v41  ;;  %v1747_v52 = vld [vmem:[%s1611_s17 + $0xb0] sm:$0xff] }
  0x23   : > { %v1741_v50 = vmul.f32 %v1661_v17, %v360_v42  ;;  %v1744_v51 = vld [vmem:[%s1611_s17 + $0xa8] sm:$0xff]  ;;  %2757 = vst [vmem:[#allocation16_spill] sm:$0xff] %v1747_v52  ;;  %v1750_v53 = vld [vmem:[%s1611_s17 + $0xc0] sm:$0xff]  ;;  %v566_v54 = vadd.f32 %v534_v45, %v497_v43  ;;  %v567_v55 = vadd.f32 %v535_v46, %v498_v44  ;;  %v1756_v57 = vld [vmem:[%s1611_s17 + $0xd8] sm:$0xff]  ;;  %v381_v60 = vmul.f32 %v1596_v0, %v1747_v52 }
  0x24   : > { %2756 = vst [vmem:[#allocation15_spill] sm:$0xff] %v1744_v51  ;;  %v1753_v56 = vld [vmem:[%s1611_s17 + $0xc8] sm:$0xff]  ;;  %v1759_v58 = vld [vmem:[%s1611_s17 + $0xe0] sm:$0xff]  ;;  %v380_v59 = vmul.f32 %v1596_v0, %v1744_v51  ;;  %v1766_v61 = vld [vmem:[%s1611_s17 + $0xf0] sm:$0xff]  ;;  %v382_v11 = vmul.f32 %v1596_v0, %v1750_v53  ;;  %v384_v13 = vmul.f32 %v1596_v0, %v1756_v57 }
  0x25   : > { %v1769_v62 = vld [vmem:[%s1611_s17 + $0xf8] sm:$0xff]  ;;  %v1772_v63 = vld [vmem:[%s1611_s17 + $0xa9] sm:$0xff]  ;;  %v383_v12 = vmul.f32 %v1596_v0, %v1753_v56  ;;  %v385_v14 = vmul.f32 %v1596_v0, %v1759_v58  ;;  %v635_v27 = vadd.f32 %v603_v15, %v566_v54  ;;  %v636_v28 = vadd.f32 %v604_v22, %v567_v55  ;;  %v1786_v30 = vld [vmem:[%s1611_s17 + $0xc1] sm:$0xff] }
  0x26   : > { %2758 = vst [vmem:[#allocation17_spill] sm:$0xff] %v1772_v63  ;;  %v1783_v29 = vld [vmem:[%s1611_s17 + $0xb1] sm:$0xff]  ;;  %v1789_v41 = vld [vmem:[%s1611_s17 + $0xc9] sm:$0xff]  ;;  %v1793_v42 = vmul.f32 %v1596_v0, %v1766_v61  ;;  %v1797_v43 = vmul.f32 %v1596_v0, %v1769_v62  ;;  %v1800_v44 = vld [vmem:[%s1611_s17 + $0xd9] sm:$0xff]  ;;  %v449_v45 = vmul.f32 %v1601_v1, %v1772_v63  ;;  %v451_v54 = vmul.f32 %v1601_v1, %v1786_v30 }
  0x27   : > { %2759 = vst [vmem:[#allocation18_spill] sm:$0xff] %v1783_v29  ;;  %v1803_v15 = vld [vmem:[%s1611_s17 + $0xe1] sm:$0xff]  ;;  %v1806_v22 = vld [vmem:[%s1611_s17 + $0xf1] sm:$0xff]  ;;  %v450_v46 = vmul.f32 %v1601_v1, %v1783_v29  ;;  %v452_v55 = vmul.f32 %v1601_v1, %v1789_v41  ;;  %v310_v20 = vld [vmem:[%s1611_s17 + $0xf9] sm:$0xff]  ;;  %v453_v6 = vmul.f32 %v1601_v1, %v1800_v44 }
  0x28   : > { %2760 = vst [vmem:[#allocation19_spill] sm:$0xff] %v1793_v42  ;;  %2761 = vst [vmem:[#allocation20_spill] sm:$0xff] %v1797_v43  ;;  %v704_v43 = vadd.f32 %v672_v31, %v635_v27  ;;  %v705_v42 = vadd.f32 %v673_v36, %v636_v28  ;;  %v1818_v19 = vld [vmem:[%s1611_s17 + $0xaa] sm:$0xff]  ;;  %v1821_v7 = vld [vmem:[%s1611_s17 + $0xb2] sm:$0xff]  ;;  %v454_v29 = vmul.f32 %v1601_v1, %v1803_v15 }
  0x29   : > { %v1829_v63 = vmul.f32 %v1601_v1, %v1806_v22  ;;  %v1832_v31 = vmul.f32 %v1601_v1, %v310_v20  ;;  %v481_v36 = vadd.f32 %v449_v45, %v380_v59  ;;  %v482_v27 = vadd.f32 %v450_v46, %v381_v60  ;;  %v1835_v32 = vld [vmem:[%s1611_s17 + $0xc2] sm:$0xff]  ;;  %v1838_v25 = vld [vmem:[%s1611_s17 + $0xca] sm:$0xff] }
  0x2a   : > { %v773_v28 = vadd.f32 %v741_v47, %v704_v43  ;;  %v774_v52 = vadd.f32 %v742_v48, %v705_v42  ;;  %v483_v51 = vadd.f32 %v451_v54, %v382_v11  ;;  %v484_v39 = vadd.f32 %v452_v55, %v383_v12  ;;  %v1847_v47 = vld [vmem:[%s1611_s17 + $0xda] sm:$0xff]  ;;  %v1850_v48 = vld [vmem:[%s1611_s17 + $0xe2] sm:$0xff] }
  0x2b   : > { %2762 = vst [vmem:[#allocation21_spill] sm:$0xff] %v1829_v63  ;;  %2763 = vst [vmem:[#allocation22_spill] sm:$0xff] %v1832_v31  ;;  %v485_v18 = vadd.f32 %v453_v6, %v384_v13  ;;  %v486_v40 = vadd.f32 %v454_v29, %v385_v14  ;;  %v518_v63 = vmul.f32 %v1640_v9, %v1818_v19  ;;  %v1865_v42 = vld [vmem:[%s2713_s3] ss:$0 sm:$0xff] }
  0x2c   : > { %v519_v35 = vmul.f32 %v1640_v9, %v1821_v7  ;;  %v842_v31 = vadd.f32 %v1679_v23, %v773_v28  ;;  %v843_v59 = vadd.f32 %v1682_v24, %v774_v52  ;;  %v520_v60 = vmul.f32 %v1640_v9, %v1835_v32 }
  0x2d   : > { %v521_v6 = vmul.f32 %v1640_v9, %v1838_v25  ;;  %v522_v11 = vmul.f32 %v1640_v9, %v1847_v47  ;;  %v523_v12 = vmul.f32 %v1640_v9, %v1850_v48  ;;  %v550_v13 = vadd.f32 %v518_v63, %v481_v36 }
  0x2e   : > { %v551_v23 = vadd.f32 %v519_v35, %v482_v27  ;;  %v911_v24 = vadd.f32 %v1715_v37, %v842_v31  ;;  %v912_v52 = vadd.f32 %v1718_v38, %v843_v59  ;;  %v552_v14 = vadd.f32 %v520_v60, %v483_v51 }
  0x2f   : > { %v553_v29 = vadd.f32 %v521_v6, %v484_v39  ;;  %v554_v43 = vadd.f32 %v522_v11, %v485_v18  ;;  %v555_v45 = vadd.f32 %v523_v12, %v486_v40  ;;  %v587_v46 = vmul.f32 %v1606_v2, %v1750_v53 }
  0x30   : > { %v588_v35 = vmul.f32 %v1606_v2, %v1753_v56  ;;  %v980_v37 = vadd.f32 %v1738_v49, %v911_v24  ;;  %v981_v38 = vadd.f32 %v1741_v50, %v912_v52  ;;  %v589_v39 = vmul.f32 %v1606_v2, %v1756_v57 }
  0x31   : > { %v590_v51 = vmul.f32 %v1606_v2, %v1759_v58  ;;  %v591_v18 = vmul.f32 %v1606_v2, %v1766_v61  ;;  %v592_v40 = vmul.f32 %v1606_v2, %v1769_v62  ;;  %v619_v63 = vadd.f32 %v587_v46, %v550_v13 }
  0x32   : > { %v620_v54 = vadd.f32 %v588_v35, %v551_v23  ;;  %v1019_v55 = vadd.f32 %v1865_v42, %v980_v37  ;;  %v1020_v49 = vadd.f32 %v1865_v42, %v981_v38  ;;  %v621_v31 = vadd.f32 %v589_v39, %v552_v14  ;;  %v1909_v39 = vld [vmem:[%s1611_s17 + $0x150] sm:$0xff] }
  0x33   : > { %v622_v50 = vadd.f32 %v590_v51, %v553_v29  ;;  %v623_v36 = vadd.f32 %v591_v18, %v554_v43  ;;  %v624_v27 = vadd.f32 %v592_v40, %v555_v45  ;;  %v656_v28 = vmul.f32 %v1616_v3, %v1786_v30  ;;  %v1912_v51 = vld [vmem:[%s1611_s17 + $0x158] sm:$0xff] }
  0x34   : > { %v657_v59 = vmul.f32 %v1616_v3, %v1789_v41  ;;  %v1051_v61 = vmax.f32 %v1019_v55, 0.0  ;;  %v1052_v60 = vmax.f32 %v1020_v49, 0.0  ;;  %v658_v62 = vmul.f32 %v1616_v3, %v1800_v44  ;;  %v1919_v55 = vld [vmem:[%s1611_s17 + $0x151] sm:$0xff]  ;;  %v1922_v49 = vld [vmem:[%s1611_s17 + $0x159] sm:$0xff] }
  0x35   : > { %v659_v6 = vmul.f32 %v1616_v3, %v1803_v15  ;;  %v660_v11 = vmul.f32 %v1616_v3, %v1806_v22  ;;  %v661_v12 = vmul.f32 %v1616_v3, %v310_v20  ;;  %v688_v13 = vadd.f32 %v656_v28, %v619_v63 }
  0x36   : > { %v689_v23 = vadd.f32 %v657_v59, %v620_v54  ;;  %v1083_v24 = vmin.f32 %v1051_v61, 6.0  ;;  %v1084_v52 = vmin.f32 %v1052_v60, 6.0  ;;  %v690_v14 = vadd.f32 %v658_v62, %v621_v31  ;;  %v1925_v31 = vld [vmem:[%s1611_s17 + $0x152] sm:$0xff] }
  0x37   : > { %v691_v29 = vadd.f32 %v659_v6, %v622_v50  ;;  %v1894_v43 = vadd.f32 %v660_v11, %v623_v36  ;;  %v1896_v45 = vadd.f32 %v661_v12, %v624_v27  ;;  %v725_v22 = vmul.f32 %v1656_v16, %v1835_v32  ;;  %v1937_v27 = vld [vmem:[%s1611_s17 + $0x15a] sm:$0xff] }
  0x38   : > { %v726_v20 = vmul.f32 %v1656_v16, %v1838_v25  ;;  %v1100_v46 = vpack.c.bf16 %v1084_v52, %v1083_v24  ;;  %v727_v35 = vmul.f32 %v1656_v16, %v1847_v47  ;;  %v728_v37 = vmul.f32 %v1656_v16, %v1850_v48 }
  0x39   : > { %2764 = vst [vmem:[#allocation23_spill] sm:$0xff] %v1894_v43  ;;  %2765 = vst [vmem:[#allocation24_spill] sm:$0xff] %v1896_v45  ;;  %v794_v38 = vmul.f32 %v1621_v4, %v1756_v57  ;;  %v757_v18 = vadd.f32 %v725_v22, %v688_v13  ;;  %v795_v63 = vmul.f32 %v1621_v4, %v1759_v58  ;;  %v2777_v43 = vld [vmem:[#allocation16_spill] sm:$0xff] }
  0x3a   : > { %v758_v40 = vadd.f32 %v726_v20, %v689_v23  ;;  %v863_v54 = vmul.f32 %v1626_v5, %v1800_v44  ;;  %1345 = vmatprep.subr.msk.bf16.mxu0 %vm1108_vm0, %v1100_v46  ;;  %v1928_v57 = vadd.f32 %v727_v35, %v690_v14  ;;  %v1930_v50 = vadd.f32 %v728_v37, %v691_v29  ;;  %v1960_v14 = vld [vmem:[%s1611_s17 + $0x90] sm:$0xff]  ;;  %v1967_v35 = vld [vmem:[%s1611_s17 + $0x98] sm:$0xff] }
  0x3b   : > { %v864_v36 = vmul.f32 %v1626_v5, %v1803_v15  ;;  %v932_v58 = vmul.f32 %v1661_v17, %v1847_v47  ;;  %v826_v44 = vadd.f32 %v794_v38, %v757_v18  ;;  %v933_v59 = vmul.f32 %v1661_v17, %v1850_v48  ;;  %v1970_v37 = vld [vmem:[%s1611_s17 + $0x91] sm:$0xff] }
  0x3c   : > { %2766 = vst [vmem:[#allocation25_spill] sm:$0xff] %v1928_v57  ;;  %2767 = vst [vmem:[#allocation26_spill] sm:$0xff] %v1930_v50  ;;  %v827_v28 = vadd.f32 %v795_v63, %v758_v40  ;;  %v394_v61 = vmul.f32 %v1596_v0, %v1909_v39  ;;  %v395_v60 = vmul.f32 %v1596_v0, %v1912_v51  ;;  %v2768_v40 = vld [vmem:[#allocation12_spill] sm:$0xff]  ;;  %v2776_v50 = vld [vmem:[#allocation15_spill] sm:$0xff] }
  0x3d   : > { %v463_v15 = vmul.f32 %v1601_v1, %v1919_v55  ;;  %v464_v47 = vmul.f32 %v1601_v1, %v1922_v49  ;;  %v532_v62 = vmul.f32 %v1640_v9, %v1925_v31  ;;  %v895_v6 = vadd.f32 %v863_v54, %v826_v44  ;;  %v1977_v54 = vld [vmem:[%s1611_s17 + $0x99] sm:$0xff] }
  0x3e   : > { %v896_v11 = vadd.f32 %v864_v36, %v827_v28  ;;  %v533_v48 = vmul.f32 %v1640_v9, %v1937_v27  ;;  %v739_v12 = vmul.f32 %v1656_v16, %v1704_v33  ;;  %v740_v24 = vmul.f32 %v1656_v16, %v1707_v34  ;;  %2769 = vst [vmem:[#allocation12_spill] sm:$0xff] %v1977_v54  ;;  %v1980_v36 = vld [vmem:[%s1611_s17 + $0x92] sm:$0xff]  ;;  %v1987_v28 = vld [vmem:[%s1611_s17 + $0x9a] sm:$0xff] }
  0x3f   : > { %v495_v13 = vadd.f32 %v463_v15, %v394_v61  ;;  %v496_v23 = vadd.f32 %v464_v47, %v395_v60  ;;  %v808_v52 = vmul.f32 %v1621_v4, %v1635_v8  ;;  %v964_v29 = vadd.f32 %v932_v58, %v895_v6  ;;  %2770 = vst [vmem:[#allocation27_spill] sm:$0xff] %v1980_v36  ;;  %v2771_v58 = vld [vmem:[#allocation14_spill] sm:$0xff] }
  0x40   : > { %v965_v22 = vadd.f32 %v933_v59, %v896_v11  ;;  %v809_v20 = vmul.f32 %v1621_v4, %v1643_v10  ;;  %v877_v46 = vmul.f32 %v1626_v5, %v1674_v21  ;;  %v878_v8 = vmul.f32 %v1626_v5, %v1689_v26  ;;  %v2772_v26 = vld [vmem:[#allocation7_spill] sm:$0xff]  ;;  %v2773_v60 = vld [vmem:[#allocation10_spill] sm:$0xff] }
  0x41   : > { %v564_v38 = vadd.f32 %v532_v62, %v495_v13  ;;  %v565_v18 = vadd.f32 %v533_v48, %v496_v23  ;;  %v946_v63 = vmul.f32 %v1661_v17, %v2768_v40  ;;  %v1003_v10 = vadd.f32 %v1865_v42, %v964_v29  ;;  %v2774_v23 = vld [vmem:[#allocation11_spill] sm:$0xff] }
  0x42   : > { %v1004_v21 = vadd.f32 %v1865_v42, %v965_v22  ;;  %v947_v44 = vmul.f32 %v1661_v17, %v2771_v58  ;;  %v378_v59 = vmul.f32 %v1596_v0, %v1960_v14  ;;  %v379_v47 = vmul.f32 %v1596_v0, %v1967_v35  ;;  %v2775_v22 = vld [vmem:[#allocation13_spill] sm:$0xff] }
  0x43   : > { %v633_v61 = vadd.f32 %v2772_v26, %v564_v38  ;;  %v634_v15 = vadd.f32 %v2773_v60, %v565_v18  ;;  %v447_v62 = vmul.f32 %v1601_v1, %v1970_v37  ;;  %v1035_v6 = vmax.f32 %v1003_v10, 0.0 }
  0x44   : > { %v1036_v11 = vmax.f32 %v1004_v21, 0.0  ;;  %v448_v48 = vmul.f32 %v1601_v1, %v1977_v54  ;;  %v516_v13 = vmul.f32 %v1640_v9, %v1980_v36  ;;  %v517_v18 = vmul.f32 %v1640_v9, %v1987_v28 }
  0x45   : > { %v702_v29 = vadd.f32 %v2774_v23, %v633_v61  ;;  %v703_v38 = vadd.f32 %v2775_v22, %v634_v15  ;;  %v479_v40 = vadd.f32 %v447_v62, %v378_v59  ;;  %v1067_v58 = vmin.f32 %v1035_v6, 6.0  ;;  %v2778_v23 = vld [vmem:[#allocation17_spill] sm:$0xff]  ;;  %v2779_v15 = vld [vmem:[#allocation18_spill] sm:$0xff] }
  0x46   : > { %v1068_v26 = vmin.f32 %v1036_v11, 6.0  ;;  %v480_v60 = vadd.f32 %v448_v48, %v379_v47  ;;  %v585_v10 = vmul.f32 %v1606_v2, %v2776_v50  ;;  %v586_v36 = vmul.f32 %v1606_v2, %v2777_v43 }
  0x47   : > { %v771_v21 = vadd.f32 %v739_v12, %v702_v29  ;;  %v772_v57 = vadd.f32 %v740_v24, %v703_v38  ;;  %v548_v45 = vadd.f32 %v516_v13, %v479_v40  ;;  %v654_v59 = vmul.f32 %v1616_v3, %v2778_v23 }
  0x48   : > { %v1092_v54 = vpack.c.bf16 %v1068_v26, %v1067_v58  ;;  %v549_v61 = vadd.f32 %v517_v18, %v480_v60  ;;  %v655_v62 = vmul.f32 %v1616_v3, %v2779_v15  ;;  %v723_v12 = vmul.f32 %v1656_v16, %v1818_v19  ;;  %v2043_v60 = vld [vmem:[%s1611_s17 + $0x13a] sm:$0xff] }
  0x49   : > { %v840_v47 = vadd.f32 %v808_v52, %v771_v21  ;;  %v841_v6 = vadd.f32 %v809_v20, %v772_v57  ;;  %v617_v11 = vadd.f32 %v585_v10, %v548_v45  ;;  %v724_v13 = vmul.f32 %v1656_v16, %v1821_v7  ;;  %v2023_v52 = vld [vmem:[%s1611_s17 + $0x138] sm:$0xff]  ;;  %v2026_v20 = vld [vmem:[%s1611_s17 + $0x140] sm:$0xff] }
  0x4a   : > { %v1134_v24 = vsel %vm1108_vm0, %v1092_v54, 0  ;;  %v618_v48 = vadd.f32 %v586_v36, %v549_v61  ;;  %v792_v29 = vmul.f32 %v1621_v4, %v1750_v53  ;;  %v793_v45 = vmul.f32 %v1621_v4, %v1753_v56  ;;  %v2029_v54 = vld [vmem:[%s1611_s17 + $0x139] sm:$0xff]  ;;  %v2046_v10 = vld [vmem:[%s1611_s17 + $0x142] sm:$0xff] }
  0x4b   : > { %1328 = vmatpush3.bf16.xpose.msra.mxu0 %v1134_v24  ;;  %v909_v22 = vadd.f32 %v877_v46, %v840_v47  ;;  %v910_v38 = vadd.f32 %v878_v8, %v841_v6  ;;  %v686_v57 = vadd.f32 %v654_v59, %v617_v11  ;;  %v861_v40 = vmul.f32 %v1626_v5, %v1786_v30  ;;  %v2038_v8 = vld [vmem:[%s1611_s17 + $0x141] sm:$0xff] }
  0x4c   : > { %v687_v36 = vadd.f32 %v655_v62, %v618_v48  ;;  %v862_v53 = vmul.f32 %v1626_v5, %v1789_v41  ;;  %v930_v46 = vmul.f32 %v1661_v17, %v1835_v32  ;;  %v931_v26 = vmul.f32 %v1661_v17, %v1838_v25 }
  0x4d   : > { %v978_v18 = vadd.f32 %v946_v63, %v909_v22  ;;  %v979_v56 = vadd.f32 %v947_v44, %v910_v38  ;;  %v755_v58 = vadd.f32 %v723_v12, %v686_v57  ;;  %v392_v30 = vmul.f32 %v1596_v0, %v2023_v52 }
  0x4e   : > { %v756_v21 = vadd.f32 %v724_v13, %v687_v36  ;;  %v393_v41 = vmul.f32 %v1596_v0, %v2026_v20  ;;  %v461_v32 = vmul.f32 %v1601_v1, %v2029_v54  ;;  %v462_v25 = vmul.f32 %v1601_v1, %v2038_v8  ;;  %v1101_v13 = vld [vmem:[%s2712_s2] sm:$0xf] }
  0x4f   : > { %v1017_v63 = vadd.f32 %v1865_v42, %v978_v18  ;;  %v1018_v44 = vadd.f32 %v1865_v42, %v979_v56  ;;  %v824_v61 = vadd.f32 %v792_v29, %v755_v58  ;;  %v530_v47 = vmul.f32 %v1640_v9, %v2043_v60  ;;  %1343 = vmatprep.mubr.msk.bf16.mxu0 %vm1108_vm0, %v1101_v13  ;;  %v2094_v13 = vld [vmem:[%s1611_s17 + $0x79] sm:$0xff] }
  0x50   : > { %v825_v59 = vadd.f32 %v793_v45, %v756_v21  ;;  %v493_v62 = vadd.f32 %v461_v32, %v392_v30  ;;  %v531_v6 = vmul.f32 %v1640_v9, %v2046_v10  ;;  %v494_v48 = vadd.f32 %v462_v25, %v393_v41 }
  0x51   : > { %v1049_v11 = vmax.f32 %v1017_v63, 0.0  ;;  %v1050_v12 = vmax.f32 %v1018_v44, 0.0  ;;  %v893_v24 = vadd.f32 %v861_v40, %v824_v61  ;;  %v599_v38 = vmul.f32 %v1606_v2, %v1909_v39  ;;  %v2780_v61 = vld [vmem:[#allocation5_spill] sm:$0xff] }
  0x52   : > { %v894_v29 = vadd.f32 %v862_v53, %v825_v59  ;;  %v562_v22 = vadd.f32 %v530_v47, %v493_v62  ;;  %v600_v57 = vmul.f32 %v1606_v2, %v1912_v51  ;;  %v563_v40 = vadd.f32 %v531_v6, %v494_v48  ;;  %v2083_v59 = vld [vmem:[%s1611_s17 + $0x78] sm:$0xff]  ;;  %v2781_v6 = vld [vmem:[#allocation6_spill] sm:$0xff]  ;;  %v2091_v48 = vld [vmem:[%s1611_s17 + $0x80] sm:$0xff] }
  0x53   : > { %v1081_v45 = vmin.f32 %v1049_v11, 6.0  ;;  %v1082_v36 = vmin.f32 %v1050_v12, 6.0  ;;  %v962_v18 = vadd.f32 %v930_v46, %v893_v24  ;;  %v668_v21 = vmul.f32 %v1616_v3, %v1919_v55  ;;  %v2782_v12 = vld [vmem:[#allocation8_spill] sm:$0xff] }
  0x54   : > { %v963_v56 = vadd.f32 %v931_v26, %v894_v29  ;;  %v631_v58 = vadd.f32 %v599_v38, %v562_v22  ;;  %v669_v53 = vmul.f32 %v1616_v3, %v1922_v49  ;;  %v632_v32 = vadd.f32 %v600_v57, %v563_v40  ;;  %v2783_v38 = vld [vmem:[#allocation9_spill] sm:$0xff] }
  0x55   : > { %v1099_v30 = vpack.c.bf16 %v1082_v36, %v1081_v45  ;;  %v1001_v41 = vadd.f32 %v1865_v42, %v962_v18  ;;  %v737_v63 = vmul.f32 %v1656_v16, %v1925_v31  ;;  %v738_v44 = vmul.f32 %v1656_v16, %v1937_v27  ;;  %v2101_v36 = vld [vmem:[%s1611_s17 + $0x81] sm:$0xff] }
  0x56   : > { %v1002_v46 = vadd.f32 %v1865_v42, %v963_v56  ;;  %v700_v26 = vadd.f32 %v668_v21, %v631_v58  ;;  %v806_v25 = vmul.f32 %v1621_v4, %v2780_v61  ;;  %v701_v47 = vadd.f32 %v669_v53, %v632_v32  ;;  %v2104_v18 = vld [vmem:[%s1611_s17 + $0x7a] sm:$0xff]  ;;  %v2107_v40 = vld [vmem:[%s1611_s17 + $0x82] sm:$0xff] }
  0x57   : > { %1346 = vmatprep.subr.msk.bf16.mxu0 %vm1108_vm0, %v1099_v30  ;;  %v1033_v62 = vmax.f32 %v1001_v41, 0.0  ;;  %v807_v11 = vmul.f32 %v1621_v4, %v2781_v6  ;;  %v875_v24 = vmul.f32 %v1626_v5, %v2782_v12  ;;  %v876_v57 = vmul.f32 %v1626_v5, %v2783_v38 }
  0x58   : > { %v1034_v29 = vmax.f32 %v1002_v46, 0.0  ;;  %v769_v22 = vadd.f32 %v737_v63, %v700_v26  ;;  %v944_v45 = vmul.f32 %v1661_v17, %v1704_v33  ;;  %v770_v58 = vadd.f32 %v738_v44, %v701_v47 }
  0x59   : > { %v1065_v56 = vmin.f32 %v1033_v62, 6.0  ;;  %v945_v21 = vmul.f32 %v1661_v17, %v1707_v34  ;;  %v376_v53 = vmul.f32 %v1596_v0, %v2083_v59  ;;  %v377_v32 = vmul.f32 %v1596_v0, %v2091_v48 }
  0x5a   : > { %v1066_v30 = vmin.f32 %v1034_v29, 6.0  ;;  %v838_v41 = vadd.f32 %v806_v25, %v769_v22  ;;  %v445_v33 = vmul.f32 %v1601_v1, %v2094_v13  ;;  %v839_v63 = vadd.f32 %v807_v11, %v770_v58 }
  0x5b   : > { %v446_v46 = vmul.f32 %v1601_v1, %v2101_v36  ;;  %v514_v26 = vmul.f32 %v1640_v9, %v2104_v18  ;;  %v515_v34 = vmul.f32 %v1640_v9, %v2107_v40  ;;  %v583_v25 = vmul.f32 %v1606_v2, %v1960_v14 }
  0x5c   : > { %v1091_v44 = vpack.c.bf16 %v1066_v30, %v1065_v56  ;;  %v907_v61 = vadd.f32 %v875_v24, %v838_v41  ;;  %v477_v62 = vadd.f32 %v445_v33, %v376_v53  ;;  %v908_v47 = vadd.f32 %v876_v57, %v839_v63  ;;  %v2784_v56 = vld [vmem:[#allocation12_spill] sm:$0xff]  ;;  %v2785_v53 = vld [vmem:[#allocation27_spill] sm:$0xff] }
  0x5d   : > { %v478_v6 = vadd.f32 %v446_v46, %v377_v32  ;;  %v584_v11 = vmul.f32 %v1606_v2, %v1967_v35  ;;  %v652_v12 = vmul.f32 %v1616_v3, %v1970_v37  ;;  %v653_v24 = vmul.f32 %v1616_v3, %v2784_v56  ;;  %v2142_v46 = vld [vmem:[%s1611_s17 + $0x120] sm:$0xff] }
  0x5e   : > { %v1131_v29 = vsel %vm1108_vm0, %v1091_v44, 0  ;;  %v976_v22 = vadd.f32 %v944_v45, %v907_v61  ;;  %v546_v38 = vadd.f32 %v514_v26, %v477_v62  ;;  %v977_v57 = vadd.f32 %v945_v21, %v908_v47  ;;  %2786 = vst [vmem:[#allocation14_spill] sm:$0xff] %v2142_v46  ;;  %v2145_v21 = vld [vmem:[%s1611_s17 + $0x128] sm:$0xff] }
  0x5f   : > { %1330 = vmatpush3.bf16.xpose.msra.mxu0 %v1131_v29  ;;  %v547_v58 = vadd.f32 %v515_v34, %v478_v6  ;;  %v721_v30 = vmul.f32 %v1656_v16, %v2785_v53  ;;  %v722_v41 = vmul.f32 %v1656_v16, %v1987_v28  ;;  %v790_v45 = vmul.f32 %v1621_v4, %v2776_v50  ;;  %v2153_v62 = vld [vmem:[%s1611_s17 + $0x121] sm:$0xff] }
  0x60   : > { %v1015_v32 = vadd.f32 %v1865_v42, %v976_v22  ;;  %v615_v33 = vadd.f32 %v583_v25, %v546_v38  ;;  %v791_v63 = vmul.f32 %v1621_v4, %v2777_v43  ;;  %v1016_v26 = vadd.f32 %v1865_v42, %v977_v57  ;;  %v2156_v25 = vld [vmem:[%s1611_s17 + $0x129] sm:$0xff] }
  0x61   : > { %v616_v34 = vadd.f32 %v584_v11, %v547_v58  ;;  %v859_v44 = vmul.f32 %v1626_v5, %v2778_v23  ;;  %v860_v61 = vmul.f32 %v1626_v5, %v2779_v15  ;;  %2787 = vst [vmem:[#allocation7_spill] sm:$0xff] %v2156_v25  ;;  %v928_v43 = vmul.f32 %v1661_v17, %v1818_v19  ;;  %v2163_v29 = vld [vmem:[%s1611_s17 + $0x122] sm:$0xff]  ;;  %v2166_v11 = vld [vmem:[%s1611_s17 + $0x12a] sm:$0xff] }
  0x62   : > { %v1047_v50 = vmax.f32 %v1015_v32, 0.0  ;;  %v684_v47 = vadd.f32 %v652_v12, %v615_v33  ;;  %v929_v6 = vmul.f32 %v1661_v17, %v1821_v7  ;;  %2788 = vst [vmem:[#allocation10_spill] sm:$0xff] %v2166_v11  ;;  %v1048_v23 = vmax.f32 %v1016_v26, 0.0 }
  0x63   : > { %v685_v22 = vadd.f32 %v653_v24, %v616_v34  ;;  %v390_v15 = vmul.f32 %v1596_v0, %v2142_v46  ;;  %v391_v38 = vmul.f32 %v1596_v0, %v2145_v21  ;;  %v459_v19 = vmul.f32 %v1601_v1, %v2153_v62 }
  0x64   : > { %v1079_v57 = vmin.f32 %v1047_v50, 6.0  ;;  %v753_v12 = vadd.f32 %v721_v30, %v684_v47  ;;  %v460_v7 = vmul.f32 %v1601_v1, %v2156_v25  ;;  %v1080_v58 = vmin.f32 %v1048_v23, 6.0 }
  0x65   : > { %v754_v32 = vadd.f32 %v722_v41, %v685_v22  ;;  %v528_v33 = vmul.f32 %v1640_v9, %v2163_v29  ;;  %v529_v24 = vmul.f32 %v1640_v9, %v2166_v11  ;;  %v491_v34 = vadd.f32 %v459_v19, %v390_v15 }
  0x66   : > { %v822_v26 = vadd.f32 %v790_v45, %v753_v12  ;;  %v492_v46 = vadd.f32 %v460_v7, %v391_v38  ;;  %v597_v30 = vmul.f32 %v1606_v2, %v2023_v52  ;;  %v1098_v50 = vpack.c.bf16 %v1080_v58, %v1079_v57  ;;  %v2198_v7 = vld [vmem:[%s1611_s17 + $0x60] sm:$0xff] }
  0x67   : > { %v823_v47 = vadd.f32 %v791_v63, %v754_v32  ;;  %v598_v25 = vmul.f32 %v1606_v2, %v2026_v20  ;;  %v666_v41 = vmul.f32 %v1616_v3, %v2029_v54  ;;  %v560_v22 = vadd.f32 %v528_v33, %v491_v34  ;;  %v2204_v58 = vld [vmem:[%s1611_s17 + $0x61] sm:$0xff] }
  0x68   : > { %v891_v23 = vadd.f32 %v859_v44, %v822_v26  ;;  %v561_v11 = vadd.f32 %v529_v24, %v492_v46  ;;  %v667_v45 = vmul.f32 %v1616_v3, %v2038_v8  ;;  %1347 = vmatprep.subr.msk.bf16.mxu0 %vm1108_vm0, %v1098_v50  ;;  %v735_v63 = vmul.f32 %v1656_v16, %v2043_v60  ;;  %v2219_v34 = vld [vmem:[%s1611_s17 + $0x62] sm:$0xff] }
  0x69   : > { %v892_v15 = vadd.f32 %v860_v61, %v823_v47  ;;  %v736_v38 = vmul.f32 %v1656_v16, %v2046_v10  ;;  %v804_v57 = vmul.f32 %v1621_v4, %v1909_v39  ;;  %v629_v44 = vadd.f32 %v597_v30, %v560_v22  ;;  %v2201_v61 = vld [vmem:[%s1611_s17 + $0x68] sm:$0xff]  ;;  %2790 = vst [vmem:[#allocation13_spill] sm:$0xff] %v2204_v58 }
  0x6a   : > { %v960_v12 = vadd.f32 %v928_v43, %v891_v23  ;;  %v630_v46 = vadd.f32 %v598_v25, %v561_v11  ;;  %v805_v19 = vmul.f32 %v1621_v4, %v1912_v51  ;;  %2789 = vst [vmem:[#allocation11_spill] sm:$0xff] %v2201_v61  ;;  %v873_v33 = vmul.f32 %v1626_v5, %v1919_v55  ;;  %v2213_v25 = vld [vmem:[%s1611_s17 + $0x69] sm:$0xff] }
  0x6b   : > { %v961_v32 = vadd.f32 %v929_v6, %v892_v15  ;;  %v874_v39 = vmul.f32 %v1626_v5, %v1922_v49  ;;  %v942_v43 = vmul.f32 %v1661_v17, %v1925_v31  ;;  %v698_v11 = vadd.f32 %v666_v41, %v629_v44  ;;  %v2222_v6 = vld [vmem:[%s1611_s17 + $0x6a] sm:$0xff] }
  0x6c   : > { %v999_v51 = vadd.f32 %v1865_v42, %v960_v12  ;;  %v699_v24 = vadd.f32 %v667_v45, %v630_v46  ;;  %v943_v26 = vmul.f32 %v1661_v17, %v1937_v27  ;;  %v374_v49 = vmul.f32 %v1596_v0, %v2198_v7 }
  0x6d   : > { %v1000_v55 = vadd.f32 %v1865_v42, %v961_v32  ;;  %v375_v31 = vmul.f32 %v1596_v0, %v2201_v61  ;;  %v443_v30 = vmul.f32 %v1601_v1, %v2204_v58  ;;  %v767_v47 = vadd.f32 %v735_v63, %v698_v11 }
  0x6e   : > { %v1031_v50 = vmax.f32 %v999_v51, 0.0  ;;  %v768_v41 = vadd.f32 %v736_v38, %v699_v24  ;;  %v444_v27 = vmul.f32 %v1601_v1, %v2213_v25  ;;  %v512_v45 = vmul.f32 %v1640_v9, %v2219_v34 }
  0x6f   : > { %v1032_v23 = vmax.f32 %v1000_v55, 0.0  ;;  %v475_v22 = vadd.f32 %v443_v30, %v374_v49  ;;  %v513_v15 = vmul.f32 %v1640_v9, %v2222_v6  ;;  %v836_v44 = vadd.f32 %v804_v57, %v767_v47 }
  0x70   : > { %v1063_v12 = vmin.f32 %v1031_v50, 6.0  ;;  %v837_v46 = vadd.f32 %v805_v19, %v768_v41  ;;  %v476_v32 = vadd.f32 %v444_v27, %v375_v31  ;;  %v581_v63 = vmul.f32 %v1606_v2, %v2083_v59  ;;  %v2255_v27 = vld [vmem:[%s1611_s17 + $0x108] sm:$0xff] }
  0x71   : > { %v1064_v61 = vmin.f32 %v1032_v23, 6.0  ;;  %v544_v58 = vadd.f32 %v512_v45, %v475_v22  ;;  %v582_v38 = vmul.f32 %v1606_v2, %v2091_v48  ;;  %v905_v51 = vadd.f32 %v873_v33, %v836_v44  ;;  %v2262_v45 = vld [vmem:[%s1611_s17 + $0x110] sm:$0xff] }
  0x72   : > { %v906_v11 = vadd.f32 %v874_v39, %v837_v46  ;;  %v545_v24 = vadd.f32 %v513_v15, %v476_v32  ;;  %v650_v55 = vmul.f32 %v1616_v3, %v2094_v13  ;;  %v651_v57 = vmul.f32 %v1616_v3, %v2101_v36  ;;  %v2265_v15 = vld [vmem:[%s1611_s17 + $0x109] sm:$0xff] }
  0x73   : > { %v1090_v49 = vpack.c.bf16 %v1064_v61, %v1063_v12  ;;  %v613_v30 = vadd.f32 %v581_v63, %v544_v58  ;;  %v719_v19 = vmul.f32 %v1656_v16, %v2104_v18  ;;  %v974_v31 = vadd.f32 %v942_v43, %v905_v51  ;;  %v2277_v32 = vld [vmem:[%s1611_s17 + $0x10a] sm:$0xff]  ;;  %v2280_v51 = vld [vmem:[%s1611_s17 + $0x112] sm:$0xff] }
  0x74   : > { %v975_v50 = vadd.f32 %v943_v26, %v906_v11  ;;  %v614_v33 = vadd.f32 %v582_v38, %v545_v24  ;;  %v720_v39 = vmul.f32 %v1656_v16, %v2107_v40  ;;  %v788_v61 = vmul.f32 %v1621_v4, %v1960_v14  ;;  %v2268_v14 = vld [vmem:[%s1611_s17 + $0x111] sm:$0xff] }
  0x75   : > { %v1128_v47 = vsel %vm1108_vm0, %v1090_v49, 0  ;;  %v682_v41 = vadd.f32 %v650_v55, %v613_v30  ;;  %v789_v58 = vmul.f32 %v1621_v4, %v1967_v35  ;;  %v1013_v43 = vadd.f32 %v1865_v42, %v974_v31 }
  0x76   : > { %1332 = vmatpush3.bf16.xpose.msra.mxu0 %v1128_v47  ;;  %v1014_v26 = vadd.f32 %v1865_v42, %v975_v50  ;;  %v683_v23 = vadd.f32 %v651_v57, %v614_v33  ;;  %v857_v22 = vmul.f32 %v1626_v5, %v1970_v37  ;;  %v858_v35 = vmul.f32 %v1626_v5, %v2784_v56 }
  0x77   : > { %v751_v12 = vadd.f32 %v719_v19, %v682_v41  ;;  %v926_v44 = vmul.f32 %v1661_v17, %v2785_v53  ;;  %v927_v46 = vmul.f32 %v1661_v17, %v1987_v28  ;;  %v1045_v63 = vmax.f32 %v1013_v43, 0.0  ;;  %v2791_v41 = vld [vmem:[#allocation14_spill] sm:$0xff] }
  0x78   : > { %v1046_v37 = vmax.f32 %v1014_v26, 0.0  ;;  %v752_v38 = vadd.f32 %v720_v39, %v683_v23  ;;  %v388_v11 = vmul.f32 %v1596_v0, %v2255_v27  ;;  %v389_v56 = vmul.f32 %v1596_v0, %v2262_v45 }
  0x79   : > { %v820_v24 = vadd.f32 %v788_v61, %v751_v12  ;;  %v457_v53 = vmul.f32 %v1601_v1, %v2265_v15  ;;  %v458_v28 = vmul.f32 %v1601_v1, %v2268_v14  ;;  %v1077_v55 = vmin.f32 %v1045_v63, 6.0  ;;  %v2792_v63 = vld [vmem:[#allocation7_spill] sm:$0xff] }
  0x7a   : > { %v1078_v49 = vmin.f32 %v1046_v37, 6.0  ;;  %v821_v30 = vadd.f32 %v789_v58, %v752_v38  ;;  %v526_v57 = vmul.f32 %v1640_v9, %v2277_v32  ;;  %v527_v33 = vmul.f32 %v1640_v9, %v2280_v51  ;;  %v2793_v38 = vld [vmem:[#allocation10_spill] sm:$0xff] }
  0x7b   : > { %v889_v19 = vadd.f32 %v857_v22, %v820_v24  ;;  %v489_v31 = vadd.f32 %v457_v53, %v388_v11  ;;  %v490_v50 = vadd.f32 %v458_v28, %v389_v56  ;;  %v595_v61 = vmul.f32 %v1606_v2, %v2791_v41  ;;  %v2314_v53 = vld [vmem:[%s1611_s17 + $0x50] sm:$0xff] }
  0x7c   : > { %v1097_v39 = vpack.c.bf16 %v1078_v49, %v1077_v55  ;;  %v890_v47 = vadd.f32 %v858_v35, %v821_v30  ;;  %v596_v43 = vmul.f32 %v1606_v2, %v2145_v21  ;;  %v664_v22 = vmul.f32 %v1616_v3, %v2153_v62  ;;  %v2324_v49 = vld [vmem:[%s1611_s17 + $0x49] sm:$0xff] }
  0x7d   : > { %v958_v58 = vadd.f32 %v926_v44, %v889_v19  ;;  %v558_v26 = vadd.f32 %v526_v57, %v489_v31  ;;  %v559_v23 = vadd.f32 %v527_v33, %v490_v50  ;;  %v665_v35 = vmul.f32 %v1616_v3, %v2792_v63  ;;  %v2329_v31 = vld [vmem:[%s1611_s17 + $0x51] sm:$0xff] }
  0x7e   : > { %1348 = vmatprep.subr.msk.bf16.mxu0 %vm1108_vm0, %v1097_v39  ;;  %v959_v12 = vadd.f32 %v927_v46, %v890_v47  ;;  %v733_v37 = vmul.f32 %v1656_v16, %v2163_v29  ;;  %v734_v11 = vmul.f32 %v1656_v16, %v2793_v38  ;;  %v802_v56 = vmul.f32 %v1621_v4, %v2023_v52  ;;  %v2311_v46 = vld [vmem:[%s1611_s17 + $0x48] sm:$0xff]  ;;  %v2335_v33 = vld [vmem:[%s1611_s17 + $0x52] sm:$0xff] }
  0x7f   : > { %v997_v2 = vadd.f32 %v1865_v42, %v958_v58  ;;  %v627_v44 = vadd.f32 %v595_v61, %v558_v26  ;;  %v628_v24 = vadd.f32 %v596_v43, %v559_v23  ;;  %v803_v28 = vmul.f32 %v1621_v4, %v2026_v20  ;;  %v2332_v50 = vld [vmem:[%s1611_s17 + $0x4a] sm:$0xff]  ;;  %v2348_v43 = vld [vmem:[%s2711_s1 + $0x1] ss:$0 sm:$0xff] }
  0x80   : > { %v998_v3 = vadd.f32 %v1865_v42, %v959_v12  ;;  %v871_v16 = vmul.f32 %v1626_v5, %v2029_v54  ;;  %v872_v55 = vmul.f32 %v1626_v5, %v2038_v8  ;;  %v940_v19 = vmul.f32 %v1661_v17, %v2043_v60 }
  0x81   : > { %v1029_v30 = vmax.f32 %v997_v2, 0.0  ;;  %v696_v57 = vadd.f32 %v664_v22, %v627_v44  ;;  %v697_v52 = vadd.f32 %v665_v35, %v628_v24  ;;  %v941_v20 = vmul.f32 %v1661_v17, %v2046_v10  ;;  %v2795_v2 = vld [vmem:[#allocation13_spill] sm:$0xff] }
  0x82   : > { %v1030_v4 = vmax.f32 %v998_v3, 0.0  ;;  %v372_v5 = vmul.f32 %v1596_v0, %v2311_v46  ;;  %v373_v54 = vmul.f32 %v1596_v0, %v2314_v53  ;;  %v441_v60 = vmul.f32 %v1601_v1, %v2324_v49  ;;  %v2359_v1 = vld [vmem:[%s2711_s1 + $0x3] ss:$0 sm:$0xff] }
  0x83   : > { %v1061_v8 = vmin.f32 %v1029_v30, 6.0  ;;  %v765_v39 = vadd.f32 %v733_v37, %v696_v57  ;;  %v766_v47 = vadd.f32 %v734_v11, %v697_v52  ;;  %v442_v17 = vmul.f32 %v2348_v43, %v2329_v31  ;;  %v2794_v37 = vld [vmem:[#allocation11_spill] sm:$0xff]  ;;  %v2378_v52 = vld [vmem:[%s2711_s1 + $0x5] ss:$0 sm:$0xff] }
  0x84   : > { %v1062_v61 = vmin.f32 %v1030_v4, 6.0  ;;  %v510_v10 = vmul.f32 %v1640_v9, %v2332_v50  ;;  %v511_v0 = vmul.f32 %v1640_v9, %v2335_v33  ;;  %v473_v23 = vadd.f32 %v441_v60, %v372_v5  ;;  %v2368_v9 = vld [vmem:[%s2711_s1 + $0x4] ss:$0 sm:$0xff] }
  0x85   : > { %v834_v58 = vadd.f32 %v802_v56, %v765_v39  ;;  %v835_v26 = vadd.f32 %v803_v28, %v766_v47  ;;  %v579_v22 = vmul.f32 %v2359_v1, %v2198_v7  ;;  %v474_v35 = vadd.f32 %v442_v17, %v373_v54  ;;  %v2403_v17 = vld [vmem:[%s1611_s17 + $0xf2] sm:$0xff] }
  0x86   : > { %v1089_v12 = vpack.c.bf16 %v1062_v61, %v1061_v8  ;;  %v580_v11 = vmul.f32 %v2359_v1, %v2794_v37  ;;  %v648_v44 = vmul.f32 %v2368_v9, %v2795_v2  ;;  %v542_v3 = vadd.f32 %v510_v10, %v473_v23  ;;  %v2387_v8 = vld [vmem:[%s2711_s1 + $0x6] ss:$0 sm:$0xff]  ;;  %v2396_v61 = vld [vmem:[%s2711_s1 + $0x7] ss:$0 sm:$0xff]  ;;  %v2796_v23 = vld [vmem:[#allocation19_spill] sm:$0xff] }
  0x87   : > { %v903_v24 = vadd.f32 %v871_v16, %v834_v58  ;;  %v904_v56 = vadd.f32 %v872_v55, %v835_v26  ;;  %v649_v28 = vmul.f32 %v2368_v9, %v2213_v25  ;;  %v543_v57 = vadd.f32 %v511_v0, %v474_v35  ;;  %v2415_v26 = vld [vmem:[%s1611_s17 + $0xfa] sm:$0xff] }
  0x88   : > { %v1125_v30 = vsel %vm1108_vm0, %v1089_v12, 0  ;;  %v717_v4 = vmul.f32 %v2378_v52, %v2219_v34  ;;  %v718_v16 = vmul.f32 %v2378_v52, %v2222_v6  ;;  %v611_v54 = vadd.f32 %v579_v22, %v542_v3  ;;  %v2797_v22 = vld [vmem:[#allocation21_spill] sm:$0xff]  ;;  %v2798_v35 = vld [vmem:[#allocation20_spill] sm:$0xff] }
  0x89   : > { %1334 = vmatpush3.bf16.xpose.msra.mxu0 %v1125_v30  ;;  %v972_v55 = vadd.f32 %v940_v19, %v903_v24  ;;  %v973_v5 = vadd.f32 %v941_v20, %v904_v56  ;;  %v786_v39 = vmul.f32 %v2387_v8, %v2083_v59  ;;  %v612_v47 = vadd.f32 %v580_v11, %v543_v57  ;;  %v2799_v11 = vld [vmem:[#allocation22_spill] sm:$0xff]  ;;  %v2426_v30 = vld [vmem:[%s2711_s1 + $0x2] ss:$0 sm:$0xff] }
  0x8a   : > { %v787_v60 = vmul.f32 %v2387_v8, %v2091_v48  ;;  %v855_v19 = vmul.f32 %v2396_v61, %v2094_v13  ;;  %v856_v20 = vmul.f32 %v2396_v61, %v2101_v36  ;;  %v680_v0 = vadd.f32 %v648_v44, %v611_v54  ;;  %v2410_v48 = vld [vmem:[%s2711_s1 + $0x8] ss:$0 sm:$0xff] }
  0x8b   : > { %v1011_v10 = vadd.f32 %v1865_v42, %v972_v55  ;;  %v1012_v59 = vadd.f32 %v1865_v42, %v973_v5  ;;  %v924_v58 = vmul.f32 %v2410_v48, %v2104_v18  ;;  %v681_v13 = vadd.f32 %v649_v28, %v612_v47 }
  0x8c   : > { %v925_v36 = vmul.f32 %v2410_v48, %v2107_v40  ;;  %v487_v12 = vadd.f32 %v2797_v22, %v2796_v23  ;;  %v488_v44 = vadd.f32 %v2799_v11, %v2798_v35  ;;  %v749_v3 = vadd.f32 %v717_v4, %v680_v0 }
  0x8d   : > { %v1043_v24 = vmax.f32 %v1011_v10, 0.0  ;;  %v1044_v56 = vmax.f32 %v1012_v59, 0.0  ;;  %v524_v18 = vmul.f32 %v2426_v30, %v2403_v17  ;;  %v750_v28 = vadd.f32 %v718_v16, %v681_v13 }
  0x8e   : > { %v525_v40 = vmul.f32 %v2426_v30, %v2415_v26  ;;  %v593_v57 = vmul.f32 %v2359_v1, %v2255_v27  ;;  %v594_v55 = vmul.f32 %v2359_v1, %v2262_v45  ;;  %v818_v54 = vadd.f32 %v786_v39, %v749_v3  ;;  %v2455_v3 = vld [vmem:[%s1611_s17 + $0x38] sm:$0xff] }
  0x8f   : > { %v1075_v5 = vmin.f32 %v1043_v24, 6.0  ;;  %v1076_v4 = vmin.f32 %v1044_v56, 6.0  ;;  %v556_v47 = vadd.f32 %v524_v18, %v487_v12  ;;  %v819_v10 = vadd.f32 %v787_v60, %v750_v28  ;;  %v2458_v18 = vld [vmem:[%s1611_s17 + $0x31] sm:$0xff] }
  0x90   : > { %v557_v59 = vadd.f32 %v525_v40, %v488_v44  ;;  %v662_v0 = vmul.f32 %v2368_v9, %v2265_v15  ;;  %v663_v16 = vmul.f32 %v2368_v9, %v2268_v14  ;;  %v887_v23 = vadd.f32 %v855_v19, %v818_v54  ;;  %v2447_v44 = vld [vmem:[%s1611_s17 + $0x30] sm:$0xff] }
  0x91   : > { %v1096_v13 = vpack.c.bf16 %v1076_v4, %v1075_v5  ;;  %v625_v22 = vadd.f32 %v593_v57, %v556_v47  ;;  %v731_v35 = vmul.f32 %v2378_v52, %v2277_v32  ;;  %v888_v11 = vadd.f32 %v856_v20, %v819_v10  ;;  %v2474_v4 = vld [vmem:[%s1611_s17 + $0x3a] sm:$0xff] }
  0x92   : > { %v626_v39 = vadd.f32 %v594_v55, %v557_v59  ;;  %v732_v60 = vmul.f32 %v2378_v52, %v2280_v51  ;;  %v800_v12 = vmul.f32 %v2387_v8, %v2791_v41  ;;  %v956_v19 = vadd.f32 %v924_v58, %v887_v23  ;;  %v2465_v58 = vld [vmem:[%s1611_s17 + $0x39] sm:$0xff] }
  0x93   : > { %1349 = vmatprep.subr.msk.bf16.mxu0 %vm1108_vm0, %v1096_v13  ;;  %v694_v24 = vadd.f32 %v662_v0, %v625_v22  ;;  %v801_v56 = vmul.f32 %v2387_v8, %v2145_v21  ;;  %v869_v20 = vmul.f32 %v2396_v61, %v2153_v62  ;;  %v957_v28 = vadd.f32 %v925_v36, %v888_v11  ;;  %v2468_v55 = vld [vmem:[%s1611_s17 + $0x32] sm:$0xff]  ;;  %v2479_v36 = vld [vmem:[%s2711_s1] ss:$0 sm:$0xff] }
  0x94   : > { %v695_v40 = vadd.f32 %v663_v16, %v626_v39  ;;  %v870_v41 = vmul.f32 %v2396_v61, %v2792_v63  ;;  %v938_v57 = vmul.f32 %v2410_v48, %v2163_v29  ;;  %v995_v21 = vadd.f32 %v1865_v42, %v956_v19 }
  0x95   : > { %v763_v5 = vadd.f32 %v731_v35, %v694_v24  ;;  %v939_v62 = vmul.f32 %v2410_v48, %v2793_v38  ;;  %v370_v29 = vmul.f32 %v2479_v36, %v2447_v44  ;;  %v996_v63 = vadd.f32 %v1865_v42, %v957_v28 }
  0x96   : > { %v764_v54 = vadd.f32 %v732_v60, %v695_v40  ;;  %v371_v47 = vmul.f32 %v2479_v36, %v2455_v3  ;;  %v439_v10 = vmul.f32 %v2348_v43, %v2458_v18  ;;  %v1027_v38 = vmax.f32 %v995_v21, 0.0 }
  0x97   : > { %v832_v59 = vadd.f32 %v800_v12, %v763_v5  ;;  %v440_v0 = vmul.f32 %v2348_v43, %v2465_v58  ;;  %v508_v16 = vmul.f32 %v2426_v30, %v2468_v55  ;;  %v1028_v13 = vmax.f32 %v996_v63, 0.0 }
  0x98   : > { %v833_v23 = vadd.f32 %v801_v56, %v764_v54  ;;  %v471_v22 = vadd.f32 %v439_v10, %v370_v29  ;;  %v509_v35 = vmul.f32 %v2426_v30, %v2474_v4  ;;  %v1059_v11 = vmin.f32 %v1027_v38, 6.0 }
  0x99   : > { %v901_v39 = vadd.f32 %v869_v20, %v832_v59  ;;  %v472_v60 = vadd.f32 %v440_v0, %v371_v47  ;;  %v577_v19 = vmul.f32 %v2359_v1, %v2311_v46  ;;  %v1060_v24 = vmin.f32 %v1028_v13, 6.0 }
  0x9a   : > { %v902_v12 = vadd.f32 %v870_v41, %v833_v23  ;;  %v540_v28 = vadd.f32 %v508_v16, %v471_v22  ;;  %v578_v40 = vmul.f32 %v2359_v1, %v2314_v53  ;;  %v646_v56 = vmul.f32 %v2368_v9, %v2324_v49 }
  0x9b   : > { %v970_v21 = vadd.f32 %v938_v57, %v901_v39  ;;  %v541_v5 = vadd.f32 %v509_v35, %v472_v60  ;;  %v647_v29 = vmul.f32 %v2368_v9, %v2329_v31  ;;  %v1088_v63 = vpack.c.bf16 %v1060_v24, %v1059_v11 }
  0x9c   : > { %v971_v20 = vadd.f32 %v939_v62, %v902_v12  ;;  %v609_v54 = vadd.f32 %v577_v19, %v540_v28  ;;  %v715_v47 = vmul.f32 %v2378_v52, %v2332_v50  ;;  %v716_v38 = vmul.f32 %v2378_v52, %v2335_v33 }
  0x9d   : > { %v1009_v41 = vadd.f32 %v1865_v42, %v970_v21  ;;  %v610_v10 = vadd.f32 %v578_v40, %v541_v5  ;;  %v784_v57 = vmul.f32 %v2387_v8, %v2198_v7  ;;  %v1122_v59 = vsel %vm1108_vm0, %v1088_v63, 0  ;;  %v2800_v40 = vld [vmem:[#allocation23_spill] sm:$0xff]  ;;  %v2801_v21 = vld [vmem:[#allocation24_spill] sm:$0xff]  ;;  %v2537_v63 = vld [vmem:[%s1611_s17 + $0x20] sm:$0xff] }
  0x9e   : > { %v1010_v0 = vadd.f32 %v1865_v42, %v971_v20  ;;  %v678_v16 = vadd.f32 %v646_v56, %v609_v54  ;;  %v785_v62 = vmul.f32 %v2387_v8, %v2794_v37  ;;  %1336 = vmatpush3.bf16.xpose.msra.mxu0 %v1122_v59  ;;  %v853_v22 = vmul.f32 %v2396_v61, %v2795_v2  ;;  %v2540_v20 = vld [vmem:[%s1611_s17 + $0x19] sm:$0xff] }
  0x9f   : > { %v1041_v13 = vmax.f32 %v1009_v41, 0.0  ;;  %v679_v23 = vadd.f32 %v647_v29, %v610_v10  ;;  %v854_v35 = vmul.f32 %v2396_v61, %v2213_v25  ;;  %v922_v42 = vmul.f32 %v2410_v48, %v2219_v34  ;;  %v2534_v29 = vld [vmem:[%s1611_s17 + $0x18] sm:$0xff]  ;;  %v2547_v41 = vld [vmem:[%s1611_s17 + $0x21] sm:$0xff] }
  0xa0   : > { %v1042_v11 = vmax.f32 %v1010_v0, 0.0  ;;  %v747_v7 = vadd.f32 %v715_v47, %v678_v16  ;;  %v923_v37 = vmul.f32 %v2410_v48, %v2222_v6  ;;  %v729_v19 = vmul.f32 %v2378_v52, %v2403_v17  ;;  %v2552_v59 = vld [vmem:[%s1611_s17 + $0x1a] sm:$0xff]  ;;  %v2555_v0 = vld [vmem:[%s1611_s17 + $0x22] sm:$0xff] }
  0xa1   : > { %v1073_v39 = vmin.f32 %v1041_v13, 6.0  ;;  %v748_v60 = vadd.f32 %v716_v38, %v679_v23  ;;  %v730_v2 = vmul.f32 %v2378_v52, %v2415_v26  ;;  %v798_v12 = vmul.f32 %v2387_v8, %v2255_v27 }
  0xa2   : > { %v1074_v25 = vmin.f32 %v1042_v11, 6.0  ;;  %v816_v24 = vadd.f32 %v784_v57, %v747_v7  ;;  %v799_v34 = vmul.f32 %v2387_v8, %v2262_v45  ;;  %v761_v6 = vadd.f32 %v729_v19, %v2800_v40 }
  0xa3   : > { %v817_v28 = vadd.f32 %v785_v62, %v748_v60  ;;  %v762_v5 = vadd.f32 %v730_v2, %v2801_v21  ;;  %v867_v56 = vmul.f32 %v2396_v61, %v2265_v15  ;;  %v868_v45 = vmul.f32 %v2396_v61, %v2268_v14 }
  0xa4   : > { %v1095_v27 = vpack.c.bf16 %v1074_v25, %v1073_v39  ;;  %v885_v54 = vadd.f32 %v853_v22, %v816_v24  ;;  %v936_v47 = vmul.f32 %v2410_v48, %v2277_v32  ;;  %v830_v38 = vadd.f32 %v798_v12, %v761_v6 }
  0xa5   : > { %v886_v10 = vadd.f32 %v854_v35, %v817_v28  ;;  %v831_v57 = vadd.f32 %v799_v34, %v762_v5  ;;  %v937_v15 = vmul.f32 %v2410_v48, %v2280_v51  ;;  %v368_v14 = vmul.f32 %v2479_v36, %v2534_v29  ;;  %v2569_v35 = vld [vmem:[%s2713_s3] ss:$0 sm:$0xff] }
  0xa6   : > { %1350 = vmatprep.subr.msk.bf16.mxu0 %vm1108_vm0, %v1095_v27  ;;  %v954_v16 = vadd.f32 %v922_v42, %v885_v54  ;;  %v369_v32 = vmul.f32 %v2479_v36, %v2537_v63  ;;  %v437_v62 = vmul.f32 %v2348_v43, %v2540_v20  ;;  %v899_v23 = vadd.f32 %v867_v56, %v830_v38 }
  0xa7   : > { %v955_v13 = vadd.f32 %v923_v37, %v886_v10  ;;  %v900_v22 = vadd.f32 %v868_v45, %v831_v57  ;;  %v438_v51 = vmul.f32 %v2348_v43, %v2547_v41  ;;  %v506_v42 = vmul.f32 %v2426_v30, %v2552_v59 }
  0xa8   : > { %v993_v11 = vadd.f32 %v2569_v35, %v954_v16  ;;  %v469_v7 = vadd.f32 %v437_v62, %v368_v14  ;;  %v507_v39 = vmul.f32 %v2426_v30, %v2555_v0  ;;  %v968_v60 = vadd.f32 %v936_v47, %v899_v23 }
  0xa9   : > { %v994_v37 = vadd.f32 %v2569_v35, %v955_v13  ;;  %v969_v19 = vadd.f32 %v937_v15, %v900_v22  ;;  %v470_v2 = vadd.f32 %v438_v51, %v369_v32  ;;  %v575_v12 = vmul.f32 %v2359_v1, %v2447_v44 }
  0xaa   : > { %v1025_v25 = vmax.f32 %v993_v11, 0.0  ;;  %v538_v24 = vadd.f32 %v506_v42, %v469_v7  ;;  %v576_v34 = vmul.f32 %v2359_v1, %v2455_v3  ;;  %v1007_v40 = vadd.f32 %v2569_v35, %v968_v60 }
  0xab   : > { %v1026_v28 = vmax.f32 %v994_v37, 0.0  ;;  %v1008_v6 = vadd.f32 %v2569_v35, %v969_v19  ;;  %v539_v21 = vadd.f32 %v507_v39, %v470_v2  ;;  %v644_v27 = vmul.f32 %v2368_v9, %v2458_v18  ;;  %v1421_v19 = vld [vmem:[%s1611_s17 + $0xf0] sm:$0xff]  ;;  %v1422_v2 = vld [vmem:[%s1611_s17 + $0xf8] sm:$0xff] }
  0xac   : > { %v1057_v5 = vmin.f32 %v1025_v25, 6.0  ;;  %v607_v56 = vadd.f32 %v575_v12, %v538_v24  ;;  %v645_v54 = vmul.f32 %v2368_v9, %v2465_v58  ;;  %v1039_v47 = vmax.f32 %v1007_v40, 0.0  ;;  %v253_v25 = vld [vmem:[%s1611_s17] sm:$0xff]  ;;  %v254_v24 = vld [vmem:[%s1611_s17 + $0x8] sm:$0xff] }
  0xad   : > { %v1058_v45 = vmin.f32 %v1026_v28, 6.0  ;;  %v1040_v10 = vmax.f32 %v1008_v6, 0.0  ;;  %v608_v38 = vadd.f32 %v576_v34, %v539_v21  ;;  %v713_v15 = vmul.f32 %v2378_v52, %v2468_v55  ;;  %v289_v12 = vld [vmem:[%s1611_s17 + $0x1] sm:$0xff]  ;;  %v1423_v34 = vld [vmem:[%s1611_s17 + $0xf1] sm:$0xff]  ;;  %v1424_v40 = vld [vmem:[%s1611_s17 + $0xf9] sm:$0xff] }
  0xae   : > { %v676_v57 = vadd.f32 %v644_v27, %v607_v56  ;;  %v714_v16 = vmul.f32 %v2378_v52, %v2474_v4  ;;  %v782_v14 = vmul.f32 %v2387_v8, %v2311_v46  ;;  %v1071_v62 = vmin.f32 %v1039_v47, 6.0  ;;  %v290_v21 = vld [vmem:[%s1611_s17 + $0x9] sm:$0xff]  ;;  %v2802_v56 = vld [vmem:[#allocation25_spill] sm:$0xff] }
  0xaf   : > { %v1087_v32 = vpack.c.bf16 %v1058_v45, %v1057_v5  ;;  %v1072_v13 = vmin.f32 %v1040_v10, 6.0  ;;  %v677_v23 = vadd.f32 %v645_v54, %v608_v38  ;;  %v783_v51 = vmul.f32 %v2387_v8, %v2314_v53  ;;  %v2803_v54 = vld [vmem:[#allocation26_spill] sm:$0xff] }
  0xb0   : > { %v745_v22 = vadd.f32 %v713_v15, %v676_v57  ;;  %v851_v11 = vmul.f32 %v2396_v61, %v2324_v49  ;;  %v852_v7 = vmul.f32 %v2396_v61, %v2329_v31  ;;  %v920_v37 = vmul.f32 %v2410_v48, %v2332_v50  ;;  %v325_v10 = vld [vmem:[%s1611_s17 + $0x2] sm:$0xff]  ;;  %v326_v38 = vld [vmem:[%s1611_s17 + $0xa] sm:$0xff]  ;;  %s1432_s17 = scalar_lea.vmem %s1431_s10, 512 }
  0xb1   : > { %v1119_v46 = vsel %vm1108_vm0, %v1087_v32, 0  ;;  %v1094_v42 = vpack.c.bf16 %v1072_v13, %v1071_v62  ;;  %v746_v39 = vadd.f32 %v714_v16, %v677_v23  ;;  %v921_v53 = vmul.f32 %v2410_v48, %v2335_v33  ;;  %p1434_p2 = scmp.lt.s32.totalorder %s1432_s17, %s1426_s9 }
  0xb2   : > { %1338 = vmatpush3.bf16.xpose.msra.mxu0 %v1119_v46  ;;  %v814_v60 = vadd.f32 %v782_v14, %v745_v22  ;;  %v796_v49 = vmul.f32 %v1421_v19, %v2387_v8  ;;  %v797_v31 = vmul.f32 %v1422_v2, %v2387_v8  ;;  %v865_v28 = vmul.f32 %v1423_v34, %v2396_v61 }
  0xb3   : > { %1351 = vmatprep.subr.msk.bf16.mxu0 %vm1108_vm0, %v1094_v42  ;;  %v815_v50 = vadd.f32 %v783_v51, %v746_v39  ;;  %v866_v33 = vmul.f32 %v1424_v40, %v2396_v61  ;;  %v934_v6 = vmul.f32 %v2410_v48, %v2403_v17  ;;  %v935_v47 = vmul.f32 %v2410_v48, %v2415_v26  ;;  %p1435_p3 = por %p1434_p2, %p1433_p1 }
  0xb4   : > { %v883_v5 = vadd.f32 %v851_v11, %v814_v60  ;;  %v828_v27 = vadd.f32 %v796_v49, %v2802_v56  ;;  %v829_v45 = vadd.f32 %v797_v31, %v2803_v54  ;;  %v366_v15 = vmul.f32 %v2479_v36, %v253_v25 }
  0xb5   : > { %v884_v57 = vadd.f32 %v852_v7, %v815_v50  ;;  %v367_v16 = vmul.f32 %v2479_v36, %v254_v24  ;;  %v435_v14 = vmul.f32 %v2348_v43, %v289_v12  ;;  %v436_v13 = vmul.f32 %v2348_v43, %v290_v21  ;;  %p1436_p5 = pnand %p1435_p3, %p1429_p0 }
  0xb6   : > { %v952_v32 = vadd.f32 %v920_v37, %v883_v5  ;;  %v897_v17 = vadd.f32 %v865_v28, %v828_v27  ;;  %v898_v62 = vadd.f32 %v866_v33, %v829_v45  ;;  %v504_v51 = vmul.f32 %v2426_v30, %v325_v10 }
  0xb7   : > { %v953_v23 = vadd.f32 %v921_v53, %v884_v57  ;;  %v467_v22 = vadd.f32 %v435_v14, %v366_v15  ;;  %v505_v26 = vmul.f32 %v2426_v30, %v326_v38  ;;  %v468_v42 = vadd.f32 %v436_v13, %v367_v16  ;;  %v1425_v14 = vld [vmem:[%s2712_s2] sm:$0xf] }
  0xb8   : > { %v991_v11 = vadd.f32 %v2569_v35, %v952_v32  ;;  %v966_v7 = vadd.f32 %v934_v6, %v897_v17  ;;  %v967_v46 = vadd.f32 %v935_v47, %v898_v62  ;;  %v573_v37 = vmul.f32 %v2359_v1, %v2534_v29 }
  0xb9   : > { %v992_v36 = vadd.f32 %v2569_v35, %v953_v23  ;;  %v536_v39 = vadd.f32 %v504_v51, %v467_v22  ;;  %v574_v43 = vmul.f32 %v2359_v1, %v2537_v63  ;;  %v537_v30 = vadd.f32 %v505_v26, %v468_v42 }
  0xba   : > { %v1023_v60 = vmax.f32 %v991_v11, 0.0  ;;  %v1005_v53 = vadd.f32 %v2569_v35, %v966_v7  ;;  %v1006_v19 = vadd.f32 %v2569_v35, %v967_v46  ;;  %v642_v31 = vmul.f32 %v2368_v9, %v2540_v20 }
  0xbb   : > { %v1024_v49 = vmax.f32 %v992_v36, 0.0  ;;  %v605_v2 = vadd.f32 %v573_v37, %v536_v39  ;;  %v643_v25 = vmul.f32 %v2368_v9, %v2547_v41  ;;  %v606_v50 = vadd.f32 %v574_v43, %v537_v30 }
  0xbc   : > { %v1055_v24 = vmin.f32 %v1023_v60, 6.0  ;;  %v1037_v12 = vmax.f32 %v1005_v53, 0.0  ;;  %v1038_v29 = vmax.f32 %v1006_v19, 0.0  ;;  %v711_v63 = vmul.f32 %v2378_v52, %v2552_v59 }
  0xbd   : > { %v1056_v34 = vmin.f32 %v1024_v49, 6.0  ;;  %v674_v1 = vadd.f32 %v642_v31, %v605_v2  ;;  %v712_v28 = vmul.f32 %v2378_v52, %v2555_v0  ;;  %v675_v6 = vadd.f32 %v643_v25, %v606_v50  ;;  %v1102_v52 = vld [vmem:[%s2714_s4] sm:$0xff] }
  0xbe   : > { %v1069_v40 = vmin.f32 %v1037_v12, 6.0  ;;  %v1070_v33 = vmin.f32 %v1038_v29, 6.0  ;;  %v780_v20 = vmul.f32 %v2387_v8, %v2447_v44  ;;  %v781_v41 = vmul.f32 %v2387_v8, %v2455_v3 }
  0xbf   : > { %v1086_v21 = vpack.c.bf16 %v1056_v34, %v1055_v24  ;;  %v743_v9 = vadd.f32 %v711_v63, %v674_v1  ;;  %v849_v5 = vmul.f32 %v2396_v61, %v2458_v18  ;;  %v744_v27 = vadd.f32 %v712_v28, %v675_v6 }
  0xc0   : > { %v1093_v56 = vpack.c.bf16 %v1070_v33, %v1069_v40  ;;  %v850_v59 = vmul.f32 %v2396_v61, %v2465_v58  ;;  %v918_v54 = vmul.f32 %v2410_v48, %v2468_v55  ;;  %v919_v3 = vmul.f32 %v2410_v48, %v2474_v4 }
  0xc1   : > { %v1116_v0 = vsel %vm1108_vm0, %v1086_v21, 0  ;;  %v812_v44 = vadd.f32 %v780_v20, %v743_v9  ;;  %v813_v8 = vadd.f32 %v781_v41, %v744_v27  ;;  %v1504_v18 = vmov 0  }
  0xc2   : > { %1340 = vmatpush3.bf16.xpose.msra.mxu0 %v1116_v0  ;;  %1410 = vset.pattern.permute.xlu0 %v1504_v18 }
  0xc3   : > { %1352 = vmatprep.subr.msk.bf16.mxu0 %vm1108_vm0, %v1093_v56  ;;  %v881_v61 = vadd.f32 %v849_v5, %v812_v44  ;;  %1105 = vperm.xlu0 %1410, %v1102_v52   ;;  %v882_v58 = vadd.f32 %v850_v59, %v813_v8 }
  0xc5   : > { %v950_v45 = vadd.f32 %v918_v54, %v881_v61  ;;  %v951_v47 = vadd.f32 %v919_v3, %v882_v58 }
  0xc7   : > { %v989_v10 = vadd.f32 %v2569_v35, %v950_v45  ;;  %v990_v38 = vadd.f32 %v2569_v35, %v951_v47 }
  0xc9   : > { %v1021_v55 = vmax.f32 %v989_v10, 0.0  ;;  %v1022_v57 = vmax.f32 %v990_v38, 0.0 }
  0xcb   : > { %v1053_v15 = vmin.f32 %v1021_v55, 6.0  ;;  %v1054_v16 = vmin.f32 %v1022_v57, 6.0 }
  0xcd   : > { %v1085_v48 = vpack.c.bf16 %v1054_v16, %v1053_v15 }
  0xcf   : > { %v1113_v4 = vsel %vm1108_vm0, %v1085_v48, 0 }
  0xd0   : > { %1342 = vmatpush3.bf16.xpose.msra.mxu0 %v1113_v4 }
  0xd7   : > { %1344 = vmatmul.mubr.msk.bf16.vlgmr.msra.gmra.mxu0 %vm1108_vm0, %v1425_v14 }
 0x13e   : > { %v1106_v32 = vpop.permute.xlu0 %1105 }
 0x197   : > { %v1194_v17 = vpop.f32.mrf.mxu0 }
 0x198   : > { %v1195_v35 = vadd.f32 %v1194_v17, %v1106_v32 }
 0x199   : > { %v1196_v62 = vpop.f32.mrf.mxu0 }
 0x19a   : > { %v1201_v13 = vmax.f32 %v1195_v35, 0.0  ;;  %v1197_v23 = vadd.f32 %v1196_v62, %v1106_v32 }
 0x19b   : > { %v1198_v22 = vpop.f32.mrf.mxu0 }
 0x19c   : > { %v1203_v51 = vmin.f32 %v1201_v13, 6.0  ;;  %v1202_v26 = vmax.f32 %v1197_v23, 0.0 }
 0x19d   : > { %v1199_v11 = vpop.f32.mrf.mxu0 }
 0x19e   : > { %1205 = vst [vmem:[%s241_s24] sm:$0xff] %v1203_v51  ;;  %v1204_v7 = vmin.f32 %v1202_v26, 6.0 }
 0x1a0   : > { %1206 = vst [vmem:[%s241_s24 + $0x8] sm:$0xff] %v1204_v7 }
 0x1a1   : > { %1439 = shalt.err (!%p1436_p5)
}
 0x1a2   : > { %s1440_s11 = scalar_lea.hbm %s1222_s7, 256  ;;  %s1444_s14 = scalar_lea.hbm %s2715_s5, 512 }
 0x1a3   : > { %p1441_p6 = scmp.ne.s32.totalorder %s1222_s7, %s1440_s11  ;;  %p1445_p10 = scmp.lt.s32.totalorder %s1222_s7, %s2715_s5 }
 0x1a4   : > { %p1446_p11 = scmp.lt.s32.totalorder %s1444_s14, %s1440_s11 }
 0x1a5   : > { %p1442_p7 = pnand %p1441_p6, %p1576_p4 }
 0x1a6   : > { %p1447_p12 = por %p1446_p11, %p1445_p10 }
 0x1a7   : > { %p1443_p9 = pneg %p1442_p7 }
 0x1a9   : > { %p1448_p13 = pnand %p1447_p12, %p1443_p9 }
 0x1ab   : > { %1451 = shalt.err (!%p1448_p13)
}
 0x1ac   : > { %1354 = dma.vmem_to_hbm [thread:$0]  (%p1576_p4), %s1225_s25, 256, %s1222_s7, %s1208_s8  }
 0x1ad PF: > { %p1360_p0 = scmp.ge.s32.totalorder %s1502_s23, 2  ;;  %s1236_s24 = sand.u32 1, %s1482_s18  }
 0x1ae   : > { %s1237_s27 = scalar_lea.sflag [#allocation3], %s1236_s24 }
 0x1af   : > { %p1357_p1 = pnand %p1360_p0, %p1583_p8 }
 0x1b1   : > { %p1358_p2 = pneg %p1357_p1 }
 0x1b3   : > { %1477 = dma.done.wait (%p1358_p2), %s1237_s27, 256  }
 0x1b4   : > { %1479 = vsyncadd (%p1358_p2), %s1237_s27, 4294967040  ;;  %s18_s23 = sadd.s32 1, %s1502_s23   ;;  %s2804_s18 = smov %s1486_s19 }
 0x1b5   : > { %p15_p3 = scmp.ge.s32.totalorder %s18_s23, 4   ;;  %s2805_s19 = smov %s1490_s20 }
 0x1b6   : > { %s2806_s20 = smov %s1589_s6  ;;  %s2807_s21 = smov %s1498_s22 }
 0x1b7   : > { %s2808_s22 = smov %s2810_s26  ;;  %17 = sbr.rel (!%p15_p3) target bundleno = 4 (0x4), region = 75 }
 0x1bc   :  { %1242 = vsyncpa [#allocation3], 1 }
 0x1bd   :  { %1244 = vsyncpa [#allocation3 + $0x1], 1 }

</bundles_post_ra>
